<compile_context>
chip_gen: v6e
topology: v6e:2x2x1
jax: 0.10.0
libtpu: 0.0.40
codegen_flags: <defaults>
</compile_context>

<pallas_src>
from functools import partial

import numpy as np
import jax
import jax.numpy as jnp
from jax.experimental import pallas as pl
from jax.experimental.pallas import tpu as pltpu


def _make_dqn_kernel(n_layers, compute_dtype):
    def kernel(x_ref, *refs):
        # refs = (w0..w{L-1}, b0..b{L-1}, out_ref)
        w_refs = refs[:n_layers]
        b_refs = refs[n_layers:2 * n_layers]
        out_ref = refs[-1]

        h = x_ref[...]                                    # (TILE_B, 2*n_obs) f32
        for i in range(n_layers):                         # static unroll (9 layers)
            h = jnp.dot(h.astype(compute_dtype), w_refs[i][...],
                        preferred_element_type=jnp.float32)   # MXU, f32 accum
            h = h + b_refs[i][...]                        # f32 bias add (VPU)
            if i < n_layers - 1:
                h = jnp.maximum(h, 0.0)                   # f32 ReLU (VPU)
        out_ref[...] = h.astype(out_ref.dtype)            # lane-dense store
    return kernel


def prepare_params(weights, biases, *, use_bf16=False):
    """One-time weight transform.

    * Fold (x0 - x1) into layer 0: (x0 - x1) @ W0 == x_interleaved @ W0_int
      where W0_int interleaves rows [+W0[k]; -W0[k]].
    * Pad the final layer to a multiple of 128 output columns (lane-dense).
    * Optionally cast matmul operands to bf16 (accumulation stays f32).
    """
    n_obs = weights[0].shape[0]
    n_actions = weights[-1].shape[1]

    w0 = jnp.asarray(weights[0])
    w0_int = jnp.stack([w0, -w0], axis=1).reshape(2 * n_obs, w0.shape[1])
    ws = [w0_int] + [jnp.asarray(w) for w in weights[1:]]

    n_out_pad = 128 * pl.cdiv(n_actions, 128)
    w_last = jnp.zeros((ws[-1].shape[0], n_out_pad), ws[-1].dtype)
    w_last = w_last.at[:, :n_actions].set(ws[-1])
    b_last = jnp.zeros((n_out_pad,), jnp.asarray(biases[-1]).dtype)
    b_last = b_last.at[:n_actions].set(jnp.asarray(biases[-1]))
    ws = ws[:-1] + [w_last]
    bs = [jnp.asarray(b).reshape(1, -1) for b in biases[:-1]] + [b_last.reshape(1, -1)]

    if use_bf16:
        ws = [w.astype(jnp.bfloat16) for w in ws]
    return ws, bs, n_actions


@partial(jax.jit, static_argnames=("n_actions", "tile_b_max", "use_bf16"))
def dqn_forward_prepared(x, ws, bs, *, n_actions, tile_b_max=512, use_bf16=False):
    """x: (B, *obs_dims, 2) float32, params from prepare_params().
    Returns (B, n_actions) float32."""
    B = x.shape[0]
    n_in = ws[0].shape[0]                    # 2 * n_obs (interleaved frames)
    n_out_pad = ws[-1].shape[1]
    assert int(np.prod(x.shape[1:])) == n_in, "input shape mismatch"

    # Contiguous flatten; the trailing frame axis stays interleaved.
    x_flat = x.reshape(B, n_in)

    # Adaptive batch tile: multiple of 8 sublanes, capped, biggest that fits.
    tile_b = max(8, min(tile_b_max, 8 * pl.cdiv(B, 8)))
    n_tiles = pl.cdiv(B, tile_b)
    b_pad = n_tiles * tile_b
    if b_pad != B:
        x_flat = jnp.pad(x_flat, ((0, b_pad - B), (0, 0)))

    compute_dtype = jnp.bfloat16 if use_bf16 else jnp.float32
    n_layers = len(ws)
    kernel = _make_dqn_kernel(n_layers, compute_dtype)

    # Activation tile moves with the grid; weights/biases are full blocks with
    # constant index_maps (VMEM-resident, DMA'd once).
    in_specs = [pl.BlockSpec((tile_b, n_in), lambda i: (i, 0))]
    in_specs += [pl.BlockSpec(w.shape, lambda i: (0, 0)) for w in ws]
    in_specs += [pl.BlockSpec(b.shape, lambda i: (0, 0)) for b in bs]

    out = pl.pallas_call(
        kernel,
        out_shape=jax.ShapeDtypeStruct((b_pad, n_out_pad), jnp.float32),
        grid=(n_tiles,),
        in_specs=in_specs,
        out_specs=pl.BlockSpec((tile_b, n_out_pad), lambda i: (i, 0)),
        compiler_params=pltpu.CompilerParams(
            dimension_semantics=("parallel",),      # megacore sharding on v7x
            vmem_limit_bytes=32 * 1024 * 1024,      # explicit budget (v7x-safe)
        ),
    )(x_flat, *ws, *bs)

    return out[:B, :n_actions]


def dqn_forward(x, weights, biases, *, tile_b_max=512, use_bf16=False):
    """Convenience wrapper: prepares params then runs the fused kernel."""
    assert x.shape[-1] == 2
    ws, bs, n_actions = prepare_params(weights, biases, use_bf16=use_bf16)
    return dqn_forward_prepared(x, ws, bs, n_actions=n_actions,
                                tile_b_max=tile_b_max, use_bf16=use_bf16)


def init_params(key, n_obs_flat, n_actions):
    """Deterministic PyTorch-Linear-style uniform init; weights are (in, out)."""
    dims = [n_obs_flat, max(32, n_obs_flat * 2),
            64, 128, 256, 512, 256, 64, 32, n_actions]
    weights, biases = [], []
    for i in range(len(dims) - 1):
        key, kw, kb = jax.random.split(key, 3)
        bound = 1.0 / float(np.sqrt(dims[i]))
        weights.append(jax.random.uniform(
            kw, (dims[i], dims[i + 1]), jnp.float32, -bound, bound))
        biases.append(jax.random.uniform(
            kb, (dims[i + 1],), jnp.float32, -bound, bound))
    return weights, biases


def reference_forward(x, weights, biases):
    """Pure-JAX reference mirroring the PyTorch module semantics."""
    h = x[..., 0] - x[..., 1]
    h = h.reshape(h.shape[0], -1)
    for i, (w, b) in enumerate(zip(weights, biases)):
        h = h @ w + b
        if i < len(weights) - 1:
            h = jnp.maximum(h, 0.0)
    return h


if __name__ == "__main__":
    # n_observations = (4, 4, 2) -> prod = 32, // 2 = 16 input features.
    obs_shape = (4, 4, 2)
    n_actions = 8
    n_obs_flat = int(np.prod(obs_shape)) // 2  # 16

    weights, biases = init_params(jax.random.PRNGKey(0), n_obs_flat, n_actions)

    # Prepare kernel-layout params ONCE (interleave / pad / cast).
    ws, bs, n_act = prepare_params(weights, biases)

    # Small harness batch (module contract); adaptive tile => one 8-row tile.
    key = jax.random.PRNGKey(0)
    _, kx = jax.random.split(key)
    x_small = jax.random.normal(kx, (2,) + obs_shape, dtype=jnp.float32)

    out = jax.block_until_ready(
        dqn_forward_prepared(x_small, ws, bs, n_actions=n_act))
    ref = reference_forward(x_small, weights, biases)
    np.testing.assert_allclose(np.asarray(out), np.asarray(ref),
                               rtol=1e-4, atol=1e-4)
    assert out.shape == (2, n_actions)

    # Larger batch exercises a fatter tile (single 256-row grid step) and the
    # "parallel" batch axis path.
    _, kx2 = jax.random.split(kx)
    x_big = jax.random.normal(kx2, (256,) + obs_shape, dtype=jnp.float32)
    out_big = jax.block_until_ready(
        dqn_forward_prepared(x_big, ws, bs, n_actions=n_act))
    ref_big = reference_forward(x_big, weights, biases)
    np.testing.assert_allclose(np.asarray(out_big), np.asarray(ref_big),
                               rtol=1e-4, atol=1e-4)

    # bf16 matmul operands with f32 accumulation (v6e/v7x fast path).
    out_bf16 = jax.block_until_ready(
        dqn_forward(x_big, weights, biases, use_bf16=True))
    np.testing.assert_allclose(np.asarray(out_bf16), np.asarray(ref_big),
                               rtol=2e-2, atol=2e-2)

    print("KERNEL_OK")
</pallas_src>

<mosaic_0001>
module attributes {stable_mosaic.version = 11 : i64} {
  func.func @kernel(%arg0: i32, %arg1: memref<8x32xf32, #tpu.memory_space<vmem>>, %arg2: memref<32x32xf32, #tpu.memory_space<vmem>>, %arg3: memref<32x64xf32, #tpu.memory_space<vmem>>, %arg4: memref<64x128xf32, #tpu.memory_space<vmem>>, %arg5: memref<128x256xf32, #tpu.memory_space<vmem>>, %arg6: memref<256x512xf32, #tpu.memory_space<vmem>>, %arg7: memref<512x256xf32, #tpu.memory_space<vmem>>, %arg8: memref<256x64xf32, #tpu.memory_space<vmem>>, %arg9: memref<64x32xf32, #tpu.memory_space<vmem>>, %arg10: memref<32x128xf32, #tpu.memory_space<vmem>>, %arg11: memref<1x32xf32, #tpu.memory_space<vmem>>, %arg12: memref<1x64xf32, #tpu.memory_space<vmem>>, %arg13: memref<1x128xf32, #tpu.memory_space<vmem>>, %arg14: memref<1x256xf32, #tpu.memory_space<vmem>>, %arg15: memref<1x512xf32, #tpu.memory_space<vmem>>, %arg16: memref<1x256xf32, #tpu.memory_space<vmem>>, %arg17: memref<1x64xf32, #tpu.memory_space<vmem>>, %arg18: memref<1x32xf32, #tpu.memory_space<vmem>>, %arg19: memref<1x128xf32, #tpu.memory_space<vmem>>, %arg20: memref<8x128xf32, #tpu.memory_space<vmem>>) attributes {dimension_semantics = [#tpu.dimension_semantics<parallel>], iteration_bounds = array<i64: 1>, scalar_prefetch = 0 : i64, scratch_operands = 0 : i64, tpu.core_type = #tpu.core_type<tc>, window_params = [{transform_indices = @transform_0, window_bounds = array<i64: 8, 32>}, {pipeline_mode = #tpu.pipeline_mode<synchronous>, transform_indices = @transform_1, window_bounds = array<i64: 32, 32>}, {pipeline_mode = #tpu.pipeline_mode<synchronous>, transform_indices = @transform_2, window_bounds = array<i64: 32, 64>}, {pipeline_mode = #tpu.pipeline_mode<synchronous>, transform_indices = @transform_3, window_bounds = array<i64: 64, 128>}, {pipeline_mode = #tpu.pipeline_mode<synchronous>, transform_indices = @transform_4, window_bounds = array<i64: 128, 256>}, {pipeline_mode = #tpu.pipeline_mode<synchronous>, transform_indices = @transform_5, window_bounds = array<i64: 256, 512>}, {pipeline_mode = #tpu.pipeline_mode<synchronous>, transform_indices = @transform_6, window_bounds = array<i64: 512, 256>}, {pipeline_mode = #tpu.pipeline_mode<synchronous>, transform_indices = @transform_7, window_bounds = array<i64: 256, 64>}, {pipeline_mode = #tpu.pipeline_mode<synchronous>, transform_indices = @transform_8, window_bounds = array<i64: 64, 32>}, {pipeline_mode = #tpu.pipeline_mode<synchronous>, transform_indices = @transform_9, window_bounds = array<i64: 32, 128>}, {pipeline_mode = #tpu.pipeline_mode<synchronous>, transform_indices = @transform_10, window_bounds = array<i64: 1, 32>}, {pipeline_mode = #tpu.pipeline_mode<synchronous>, transform_indices = @transform_11, window_bounds = array<i64: 1, 64>}, {pipeline_mode = #tpu.pipeline_mode<synchronous>, transform_indices = @transform_12, window_bounds = array<i64: 1, 128>}, {pipeline_mode = #tpu.pipeline_mode<synchronous>, transform_indices = @transform_13, window_bounds = array<i64: 1, 256>}, {pipeline_mode = #tpu.pipeline_mode<synchronous>, transform_indices = @transform_14, window_bounds = array<i64: 1, 512>}, {pipeline_mode = #tpu.pipeline_mode<synchronous>, transform_indices = @transform_15, window_bounds = array<i64: 1, 256>}, {pipeline_mode = #tpu.pipeline_mode<synchronous>, transform_indices = @transform_16, window_bounds = array<i64: 1, 64>}, {pipeline_mode = #tpu.pipeline_mode<synchronous>, transform_indices = @transform_17, window_bounds = array<i64: 1, 32>}, {pipeline_mode = #tpu.pipeline_mode<synchronous>, transform_indices = @transform_18, window_bounds = array<i64: 1, 128>}, {transform_indices = @transform_19, window_bounds = array<i64: 8, 128>}]} {
    %c0 = arith.constant 0 : index
    %c0_0 = arith.constant 0 : index
    %0 = vector.load %arg1[%c0, %c0_0] : memref<8x32xf32, #tpu.memory_space<vmem>>, vector<8x32xf32>
    %c0_1 = arith.constant 0 : index
    %c0_2 = arith.constant 0 : index
    %1 = vector.load %arg2[%c0_1, %c0_2] : memref<32x32xf32, #tpu.memory_space<vmem>>, vector<32x32xf32>
    %cst = arith.constant dense<0.000000e+00> : vector<8x32xf32>
    %2 = tpu.matmul %0, %1, %cst {dimension_numbers = #tpu.dot_dimension_numbers<[1], [0], [0], [1], [0, 0, 1, 1], [], []>} : vector<8x32xf32>, vector<32x32xf32>, vector<8x32xf32> -> vector<8x32xf32>
    %c0_3 = arith.constant 0 : index
    %c0_4 = arith.constant 0 : index
    %3 = vector.load %arg11[%c0_3, %c0_4] : memref<1x32xf32, #tpu.memory_space<vmem>>, vector<1x32xf32>
    %4 = vector.broadcast %3 : vector<1x32xf32> to vector<8x32xf32>
    %5 = arith.addf %2, %4 : vector<8x32xf32>
    %cst_5 = arith.constant 0.000000e+00 : f32
    %6 = vector.broadcast %cst_5 : f32 to vector<8x32xf32>
    %7 = arith.maximumf %5, %6 : vector<8x32xf32>
    %c0_6 = arith.constant 0 : index
    %c0_7 = arith.constant 0 : index
    %8 = vector.load %arg3[%c0_6, %c0_7] : memref<32x64xf32, #tpu.memory_space<vmem>>, vector<32x64xf32>
    %cst_8 = arith.constant dense<0.000000e+00> : vector<8x64xf32>
    %9 = tpu.matmul %7, %8, %cst_8 {dimension_numbers = #tpu.dot_dimension_numbers<[1], [0], [0], [1], [0, 0, 1, 1], [], []>} : vector<8x32xf32>, vector<32x64xf32>, vector<8x64xf32> -> vector<8x64xf32>
    %c0_9 = arith.constant 0 : index
    %c0_10 = arith.constant 0 : index
    %10 = vector.load %arg12[%c0_9, %c0_10] : memref<1x64xf32, #tpu.memory_space<vmem>>, vector<1x64xf32>
    %11 = vector.broadcast %10 : vector<1x64xf32> to vector<8x64xf32>
    %12 = arith.addf %9, %11 : vector<8x64xf32>
    %cst_11 = arith.constant 0.000000e+00 : f32
    %13 = vector.broadcast %cst_11 : f32 to vector<8x64xf32>
    %14 = arith.maximumf %12, %13 : vector<8x64xf32>
    %c0_12 = arith.constant 0 : index
    %c0_13 = arith.constant 0 : index
    %15 = vector.load %arg4[%c0_12, %c0_13] : memref<64x128xf32, #tpu.memory_space<vmem>>, vector<64x128xf32>
    %cst_14 = arith.constant dense<0.000000e+00> : vector<8x128xf32>
    %16 = tpu.matmul %14, %15, %cst_14 {dimension_numbers = #tpu.dot_dimension_numbers<[1], [0], [0], [1], [0, 0, 1, 1], [], []>} : vector<8x64xf32>, vector<64x128xf32>, vector<8x128xf32> -> vector<8x128xf32>
    %c0_15 = arith.constant 0 : index
    %c0_16 = arith.constant 0 : index
    %17 = vector.load %arg13[%c0_15, %c0_16] : memref<1x128xf32, #tpu.memory_space<vmem>>, vector<1x128xf32>
    %18 = vector.broadcast %17 : vector<1x128xf32> to vector<8x128xf32>
    %19 = arith.addf %16, %18 : vector<8x128xf32>
    %cst_17 = arith.constant 0.000000e+00 : f32
    %20 = vector.broadcast %cst_17 : f32 to vector<8x128xf32>
    %21 = arith.maximumf %19, %20 : vector<8x128xf32>
    %c0_18 = arith.constant 0 : index
    %c0_19 = arith.constant 0 : index
    %22 = vector.load %arg5[%c0_18, %c0_19] : memref<128x256xf32, #tpu.memory_space<vmem>>, vector<128x256xf32>
    %cst_20 = arith.constant dense<0.000000e+00> : vector<8x256xf32>
    %23 = tpu.matmul %21, %22, %cst_20 {dimension_numbers = #tpu.dot_dimension_numbers<[1], [0], [0], [1], [0, 0, 1, 1], [], []>} : vector<8x128xf32>, vector<128x256xf32>, vector<8x256xf32> -> vector<8x256xf32>
    %c0_21 = arith.constant 0 : index
    %c0_22 = arith.constant 0 : index
    %24 = vector.load %arg14[%c0_21, %c0_22] : memref<1x256xf32, #tpu.memory_space<vmem>>, vector<1x256xf32>
    %25 = vector.broadcast %24 : vector<1x256xf32> to vector<8x256xf32>
    %26 = arith.addf %23, %25 : vector<8x256xf32>
    %cst_23 = arith.constant 0.000000e+00 : f32
    %27 = vector.broadcast %cst_23 : f32 to vector<8x256xf32>
    %28 = arith.maximumf %26, %27 : vector<8x256xf32>
    %c0_24 = arith.constant 0 : index
    %c0_25 = arith.constant 0 : index
    %29 = vector.load %arg6[%c0_24, %c0_25] : memref<256x512xf32, #tpu.memory_space<vmem>>, vector<256x512xf32>
    %cst_26 = arith.constant dense<0.000000e+00> : vector<8x512xf32>
    %30 = tpu.matmul %28, %29, %cst_26 {dimension_numbers = #tpu.dot_dimension_numbers<[1], [0], [0], [1], [0, 0, 1, 1], [], []>} : vector<8x256xf32>, vector<256x512xf32>, vector<8x512xf32> -> vector<8x512xf32>
    %c0_27 = arith.constant 0 : index
    %c0_28 = arith.constant 0 : index
    %31 = vector.load %arg15[%c0_27, %c0_28] : memref<1x512xf32, #tpu.memory_space<vmem>>, vector<1x512xf32>
    %32 = vector.broadcast %31 : vector<1x512xf32> to vector<8x512xf32>
    %33 = arith.addf %30, %32 : vector<8x512xf32>
    %cst_29 = arith.constant 0.000000e+00 : f32
    %34 = vector.broadcast %cst_29 : f32 to vector<8x512xf32>
    %35 = arith.maximumf %33, %34 : vector<8x512xf32>
    %c0_30 = arith.constant 0 : index
    %c0_31 = arith.constant 0 : index
    %36 = vector.load %arg7[%c0_30, %c0_31] : memref<512x256xf32, #tpu.memory_space<vmem>>, vector<512x256xf32>
    %cst_32 = arith.constant dense<0.000000e+00> : vector<8x256xf32>
    %37 = tpu.matmul %35, %36, %cst_32 {dimension_numbers = #tpu.dot_dimension_numbers<[1], [0], [0], [1], [0, 0, 1, 1], [], []>} : vector<8x512xf32>, vector<512x256xf32>, vector<8x256xf32> -> vector<8x256xf32>
    %c0_33 = arith.constant 0 : index
    %c0_34 = arith.constant 0 : index
    %38 = vector.load %arg16[%c0_33, %c0_34] : memref<1x256xf32, #tpu.memory_space<vmem>>, vector<1x256xf32>
    %39 = vector.broadcast %38 : vector<1x256xf32> to vector<8x256xf32>
    %40 = arith.addf %37, %39 : vector<8x256xf32>
    %cst_35 = arith.constant 0.000000e+00 : f32
    %41 = vector.broadcast %cst_35 : f32 to vector<8x256xf32>
    %42 = arith.maximumf %40, %41 : vector<8x256xf32>
    %c0_36 = arith.constant 0 : index
    %c0_37 = arith.constant 0 : index
    %43 = vector.load %arg8[%c0_36, %c0_37] : memref<256x64xf32, #tpu.memory_space<vmem>>, vector<256x64xf32>
    %cst_38 = arith.constant dense<0.000000e+00> : vector<8x64xf32>
    %44 = tpu.matmul %42, %43, %cst_38 {dimension_numbers = #tpu.dot_dimension_numbers<[1], [0], [0], [1], [0, 0, 1, 1], [], []>} : vector<8x256xf32>, vector<256x64xf32>, vector<8x64xf32> -> vector<8x64xf32>
    %c0_39 = arith.constant 0 : index
    %c0_40 = arith.constant 0 : index
    %45 = vector.load %arg17[%c0_39, %c0_40] : memref<1x64xf32, #tpu.memory_space<vmem>>, vector<1x64xf32>
    %46 = vector.broadcast %45 : vector<1x64xf32> to vector<8x64xf32>
    %47 = arith.addf %44, %46 : vector<8x64xf32>
    %cst_41 = arith.constant 0.000000e+00 : f32
    %48 = vector.broadcast %cst_41 : f32 to vector<8x64xf32>
    %49 = arith.maximumf %47, %48 : vector<8x64xf32>
    %c0_42 = arith.constant 0 : index
    %c0_43 = arith.constant 0 : index
    %50 = vector.load %arg9[%c0_42, %c0_43] : memref<64x32xf32, #tpu.memory_space<vmem>>, vector<64x32xf32>
    %cst_44 = arith.constant dense<0.000000e+00> : vector<8x32xf32>
    %51 = tpu.matmul %49, %50, %cst_44 {dimension_numbers = #tpu.dot_dimension_numbers<[1], [0], [0], [1], [0, 0, 1, 1], [], []>} : vector<8x64xf32>, vector<64x32xf32>, vector<8x32xf32> -> vector<8x32xf32>
    %c0_45 = arith.constant 0 : index
    %c0_46 = arith.constant 0 : index
    %52 = vector.load %arg18[%c0_45, %c0_46] : memref<1x32xf32, #tpu.memory_space<vmem>>, vector<1x32xf32>
    %53 = vector.broadcast %52 : vector<1x32xf32> to vector<8x32xf32>
    %54 = arith.addf %51, %53 : vector<8x32xf32>
    %cst_47 = arith.constant 0.000000e+00 : f32
    %55 = vector.broadcast %cst_47 : f32 to vector<8x32xf32>
    %56 = arith.maximumf %54, %55 : vector<8x32xf32>
    %c0_48 = arith.constant 0 : index
    %c0_49 = arith.constant 0 : index
    %57 = vector.load %arg10[%c0_48, %c0_49] : memref<32x128xf32, #tpu.memory_space<vmem>>, vector<32x128xf32>
    %cst_50 = arith.constant dense<0.000000e+00> : vector<8x128xf32>
    %58 = tpu.matmul %56, %57, %cst_50 {dimension_numbers = #tpu.dot_dimension_numbers<[1], [0], [0], [1], [0, 0, 1, 1], [], []>} : vector<8x32xf32>, vector<32x128xf32>, vector<8x128xf32> -> vector<8x128xf32>
    %c0_51 = arith.constant 0 : index
    %c0_52 = arith.constant 0 : index
    %59 = vector.load %arg19[%c0_51, %c0_52] : memref<1x128xf32, #tpu.memory_space<vmem>>, vector<1x128xf32>
    %60 = vector.broadcast %59 : vector<1x128xf32> to vector<8x128xf32>
    %61 = arith.addf %58, %60 : vector<8x128xf32>
    %c0_53 = arith.constant 0 : index
    %c0_54 = arith.constant 0 : index
    %62 = vector.load %arg20[%c0_53, %c0_54] : memref<8x128xf32, #tpu.memory_space<vmem>>, vector<8x128xf32>
    tpu.vector_store %arg20[%c0_53, %c0_54], %61 {strides = array<i32>} : memref<8x128xf32, #tpu.memory_space<vmem>>, vector<8x128xf32>,
    return
  }
  func.func @transform_0(%arg0: i32) -> (i32, i32) {
    %c0_i32 = arith.constant 0 : i32
    %c0_i32_0 = arith.constant 0 : i32
    return %arg0, %c0_i32 : i32, i32
  }
  func.func @transform_1(%arg0: i32) -> (i32, i32) {
    %c0_i32 = arith.constant 0 : i32
    %c0_i32_0 = arith.constant 0 : i32
    %c0_i32_1 = arith.constant 0 : i32
    return %c0_i32, %c0_i32_0 : i32, i32
  }
  func.func @transform_2(%arg0: i32) -> (i32, i32) {
    %c0_i32 = arith.constant 0 : i32
    %c0_i32_0 = arith.constant 0 : i32
    %c0_i32_1 = arith.constant 0 : i32
    return %c0_i32, %c0_i32_0 : i32, i32
  }
  func.func @transform_3(%arg0: i32) -> (i32, i32) {
    %c0_i32 = arith.constant 0 : i32
    %c0_i32_0 = arith.constant 0 : i32
    %c0_i32_1 = arith.constant 0 : i32
    return %c0_i32, %c0_i32_0 : i32, i32
  }
  func.func @transform_4(%arg0: i32) -> (i32, i32) {
    %c0_i32 = arith.constant 0 : i32
    %c0_i32_0 = arith.constant 0 : i32
    %c0_i32_1 = arith.constant 0 : i32
    return %c0_i32, %c0_i32_0 : i32, i32
  }
  func.func @transform_5(%arg0: i32) -> (i32, i32) {
    %c0_i32 = arith.constant 0 : i32
    %c0_i32_0 = arith.constant 0 : i32
    %c0_i32_1 = arith.constant 0 : i32
    return %c0_i32, %c0_i32_0 : i32, i32
  }
  func.func @transform_6(%arg0: i32) -> (i32, i32) {
    %c0_i32 = arith.constant 0 : i32
    %c0_i32_0 = arith.constant 0 : i32
    %c0_i32_1 = arith.constant 0 : i32
    return %c0_i32, %c0_i32_0 : i32, i32
  }
  func.func @transform_7(%arg0: i32) -> (i32, i32) {
    %c0_i32 = arith.constant 0 : i32
    %c0_i32_0 = arith.constant 0 : i32
    %c0_i32_1 = arith.constant 0 : i32
    return %c0_i32, %c0_i32_0 : i32, i32
  }
  func.func @transform_8(%arg0: i32) -> (i32, i32) {
    %c0_i32 = arith.constant 0 : i32
    %c0_i32_0 = arith.constant 0 : i32
    %c0_i32_1 = arith.constant 0 : i32
    return %c0_i32, %c0_i32_0 : i32, i32
  }
  func.func @transform_9(%arg0: i32) -> (i32, i32) {
    %c0_i32 = arith.constant 0 : i32
    %c0_i32_0 = arith.constant 0 : i32
    %c0_i32_1 = arith.constant 0 : i32
    return %c0_i32, %c0_i32_0 : i32, i32
  }
  func.func @transform_10(%arg0: i32) -> (i32, i32) {
    %c0_i32 = arith.constant 0 : i32
    %c0_i32_0 = arith.constant 0 : i32
    %c0_i32_1 = arith.constant 0 : i32
    return %c0_i32, %c0_i32_0 : i32, i32
  }
  func.func @transform_11(%arg0: i32) -> (i32, i32) {
    %c0_i32 = arith.constant 0 : i32
    %c0_i32_0 = arith.constant 0 : i32
    %c0_i32_1 = arith.constant 0 : i32
    return %c0_i32, %c0_i32_0 : i32, i32
  }
  func.func @transform_12(%arg0: i32) -> (i32, i32) {
    %c0_i32 = arith.constant 0 : i32
    %c0_i32_0 = arith.constant 0 : i32
    %c0_i32_1 = arith.constant 0 : i32
    return %c0_i32, %c0_i32_0 : i32, i32
  }
  func.func @transform_13(%arg0: i32) -> (i32, i32) {
    %c0_i32 = arith.constant 0 : i32
    %c0_i32_0 = arith.constant 0 : i32
    %c0_i32_1 = arith.constant 0 : i32
    return %c0_i32, %c0_i32_0 : i32, i32
  }
  func.func @transform_14(%arg0: i32) -> (i32, i32) {
    %c0_i32 = arith.constant 0 : i32
    %c0_i32_0 = arith.constant 0 : i32
    %c0_i32_1 = arith.constant 0 : i32
    return %c0_i32, %c0_i32_0 : i32, i32
  }
  func.func @transform_15(%arg0: i32) -> (i32, i32) {
    %c0_i32 = arith.constant 0 : i32
    %c0_i32_0 = arith.constant 0 : i32
    %c0_i32_1 = arith.constant 0 : i32
    return %c0_i32, %c0_i32_0 : i32, i32
  }
  func.func @transform_16(%arg0: i32) -> (i32, i32) {
    %c0_i32 = arith.constant 0 : i32
    %c0_i32_0 = arith.constant 0 : i32
    %c0_i32_1 = arith.constant 0 : i32
    return %c0_i32, %c0_i32_0 : i32, i32
  }
  func.func @transform_17(%arg0: i32) -> (i32, i32) {
    %c0_i32 = arith.constant 0 : i32
    %c0_i32_0 = arith.constant 0 : i32
    %c0_i32_1 = arith.constant 0 : i32
    return %c0_i32, %c0_i32_0 : i32, i32
  }
  func.func @transform_18(%arg0: i32) -> (i32, i32) {
    %c0_i32 = arith.constant 0 : i32
    %c0_i32_0 = arith.constant 0 : i32
    %c0_i32_1 = arith.constant 0 : i32
    return %c0_i32, %c0_i32_0 : i32, i32
  }
  func.func @transform_19(%arg0: i32) -> (i32, i32) {
    %c0_i32 = arith.constant 0 : i32
    %c0_i32_0 = arith.constant 0 : i32
    return %arg0, %c0_i32 : i32, i32
  }
}

</mosaic_0001>

<bundles_post_ra>
// kernel: dqn_forward_prepared.1
= control target key start
LH: loop header
LB: loop body
LE: loop exit
PB: predicated region body
PF: predicated region fallthrough
CT: control target
= control target key end

     0   :  { %s2024_s0 = inlined_call_operand.vmem [shape: f32[8,32], index: 0, kind: input, shape index: {}]   ;;  %s2025_s1 = inlined_call_operand.vmem [shape: f32[32,32], index: 1, kind: input, shape index: {}]   ;;  %s2026_s2 = inlined_call_operand.vmem [shape: f32[32,64], index: 2, kind: input, shape index: {}]   ;;  %s2027_s3 = inlined_call_operand.vmem [shape: f32[64,128], index: 3, kind: input, shape index: {}]   ;;  %s2028_s4 = inlined_call_operand.vmem [shape: f32[128,256], index: 4, kind: input, shape index: {}]   ;;  %s2029_s5 = inlined_call_operand.hbm [shape: f32[256,512], index: 5, kind: input, shape index: {}]   ;;  %s2030_s6 = inlined_call_operand.hbm [shape: f32[512,256], index: 6, kind: input, shape index: {}]   ;;  %s2031_s7 = inlined_call_operand.vmem [shape: f32[256,64], index: 7, kind: input, shape index: {}]   ;;  %s2032_s8 = inlined_call_operand.vmem [shape: f32[64,32], index: 8, kind: input, shape index: {}]   ;;  %s2033_s9 = inlined_call_operand.vmem [shape: f32[32,128], index: 9, kind: input, shape index: {}]   ;;  %s2034_s10 = inlined_call_operand.vmem [shape: f32[1,32], index: 10, kind: input, shape index: {}]   ;;  %s2035_s11 = inlined_call_operand.vmem [shape: f32[1,64], index: 11, kind: input, shape index: {}]   ;;  %s2036_s12 = inlined_call_operand.vmem [shape: f32[1,128], index: 12, kind: input, shape index: {}]   ;;  %s2037_s13 = inlined_call_operand.vmem [shape: f32[1,256], index: 13, kind: input, shape index: {}]   ;;  %s2038_s14 = inlined_call_operand.vmem [shape: f32[1,512], index: 14, kind: input, shape index: {}]   ;;  %s2039_s15 = inlined_call_operand.vmem [shape: f32[1,256], index: 15, kind: input, shape index: {}]   ;;  %s2040_s16 = inlined_call_operand.vmem [shape: f32[1,64], index: 16, kind: input, shape index: {}]   ;;  %s2041_s17 = inlined_call_operand.vmem [shape: f32[1,32], index: 17, kind: input, shape index: {}]   ;;  %s2042_s18 = inlined_call_operand.vmem [shape: f32[1,128], index: 18, kind: input, shape index: {}]   ;;  %s2043_s19 = inlined_call_operand.vmem [shape: f32[8,128], index: 19, kind: output, shape index: {}]  }
   0x1   :  { %2047 = sst [smem:[#allocation8_spill]] %s2024_s0 }
   0x2   :  { %2048 = sst [smem:[#allocation9_spill]] %s2025_s1 }
   0x3   :  { %2049 = sst [smem:[#allocation10_spill]] %s2026_s2 }
   0x4   :  { %2050 = sst [smem:[#allocation11_spill]] %s2027_s3 }
   0x5   :  { %24 = vsyncpa [#allocation3], 0 }
   0x6   :  { %25 = vsyncpa [#allocation5], 0  ;;  %s1541_s0 = smov [#allocation2]  }
   0x7   :  { %s41_s30 = sshll.u32 %s1541_s0, 4  ;;  %s42_s30 = int_to_ptr.vmem [resolvable:$true] %s41_s30 }
   0x8   :  { %s1505_s20 = scalar_lea.vmem %s42_s30, 16384  ;;  %p1510_p1 = scmp.lt.s32.totalorder %s42_s30, %s42_s30 }
   0x9   :  { %p1506_p0 = scmp.ne.s32.totalorder %s42_s30, %s1505_s20  ;;  %p1511_p2 = scmp.lt.s32.totalorder %s1505_s20, %s1505_s20 }
   0xb   :  { %p1512_p3 = por %p1511_p2, %p1510_p1 }
   0xd   :  { %p1513_p4 = pnand %p1512_p3, %p1506_p0 }
   0xf   :  { %1516 = shalt.err (!%p1513_p4)
}
  0x10   :  { %s1542_s21 = smov 512   ;;  %s1543_s1 = smov 32  }
  0x11   :  { %47 = dma.hbm_to_vmem [thread:$0]  %s2029_s5, 16384, %s42_s30, [#allocation3], %s1542_s21, %s1542_s21, %s1543_s1  }
  0x12   :  { %s1544_s23 = smov [#allocation4]  }
  0x13   :  { %s53_s24 = sshll.u32 %s1544_s23, 4  ;;  %s54_s24 = int_to_ptr.vmem [resolvable:$true] %s53_s24 }
  0x14   :  { %s1525_s25 = scalar_lea.vmem %s54_s24, 16384  ;;  %p1530_p6 = scmp.lt.s32.totalorder %s54_s24, %s54_s24 }
  0x15   :  { %p1526_p5 = scmp.ne.s32.totalorder %s54_s24, %s1525_s25  ;;  %p1531_p7 = scmp.lt.s32.totalorder %s1525_s25, %s1525_s25 }
  0x17   :  { %p1532_p8 = por %p1531_p7, %p1530_p6 }
  0x19   :  { %p1533_p9 = pnand %p1532_p8, %p1526_p5 }
  0x1b   :  { %1536 = shalt.err (!%p1533_p9)
}
  0x1c   :  { %s1545_s3 = smov 256   ;;  %s1546_s26 = smov 16  }
  0x1d   :  { %59 = dma.hbm_to_vmem [thread:$0]  %s2030_s6, 16384, %s54_s24, [#allocation5], %s1545_s3, %s1545_s3, %s1546_s26  }
  0x1e   :  { %1537 = dma.done.wait [#allocation3], 16384  }
  0x1f   :  { %1538 = vsyncadd [#allocation3], 4294950912 }
  0x20   :  { %1539 = dma.done.wait [#allocation5], 16384  }
  0x21   :  { %1540 = vsyncadd [#allocation5], 4294950912  ;;  %v1547_v0 = vmov 0.0   ;;  %vm1548_vm0 = vmmov 0   ;;  %s2051_s0 = sld [smem:[#allocation9_spill]]  ;;  %vm102_vm1 = vcmask 261120  }
  0x22   :  { %1418 = vmatprep.subr.mxu0 %v1547_v0  ;;  %1426 = vmatprep.mubr.msk.f32.mxu0 %vm1548_vm0, %v1547_v0  ;;  %s2052_s1 = sld [smem:[#allocation10_spill]]  ;;  %v1339_v15 = vld [vmem:[%s2034_s10] ss:$0 sm:$0xff]  ;;  %v383_v23 = vld [vmem:[%s2028_s4 + $0xf8] sm:$0xff]  ;;  %v382_v24 = vld [vmem:[%s2028_s4 + $0xf0] sm:$0xff]  ;;  %vm277_vm2 = vcmask 523264  }
  0x23   :  { %1429 = vmatprep.subr.mxu1 %v1547_v0  ;;  %1437 = vmatprep.mubr.msk.f32.mxu1 %vm1548_vm0, %v1547_v0  ;;  %s2053_s26 = sld [smem:[#allocation8_spill]]  ;;  %v381_v25 = vld [vmem:[%s2028_s4 + $0xe8] sm:$0xff]  ;;  %v380_v26 = vld [vmem:[%s2028_s4 + $0xe0] sm:$0xff]  ;;  %v379_v27 = vld [vmem:[%s2028_s4 + $0xd8] sm:$0xff] }
  0x24   :  { %s2054_s21 = sld [smem:[#allocation11_spill]]  ;;  %v378_v28 = vld [vmem:[%s2028_s4 + $0xd0] sm:$0xff]  ;;  %v377_v29 = vld [vmem:[%s2028_s4 + $0xc8] sm:$0xff]  ;;  %v376_v30 = vld [vmem:[%s2028_s4 + $0xc0] sm:$0xff] }
  0x25   :  { %v375_v31 = vld [vmem:[%s2028_s4 + $0xb8] sm:$0xff]  ;;  %v374_v32 = vld [vmem:[%s2028_s4 + $0xb0] sm:$0xff]  ;;  %v373_v33 = vld [vmem:[%s2028_s4 + $0xa8] sm:$0xff] }
  0x26   :  { %v372_v34 = vld [vmem:[%s2028_s4 + $0xa0] sm:$0xff]  ;;  %v371_v35 = vld [vmem:[%s2028_s4 + $0x98] sm:$0xff]  ;;  %v370_v36 = vld [vmem:[%s2028_s4 + $0x90] sm:$0xff] }
  0x27   :  { %v94_v1 = vld [vmem:[%s2051_s0 + $0x18] sm:$0xff]  ;;  %v93_v2 = vld [vmem:[%s2051_s0 + $0x10] sm:$0xff]  ;;  %v92_v4 = vld [vmem:[%s2051_s0 + $0x8] sm:$0xff] }
  0x28   :  { %1419 = vmatpush3.msra.mxu0 %v94_v1  ;;  %v180_v3 = vld [vmem:[%s2052_s1 + $0x18] sm:$0xff]  ;;  %v91_v5 = vld [vmem:[%s2051_s0] sm:$0xff]  ;;  %v179_v7 = vld [vmem:[%s2052_s1 + $0x10] sm:$0xff] }
  0x29   :  { %1420 = vmatprep.subr.mxu0 %v1547_v0  ;;  %1430 = vmatpush3.msra.mxu1 %v180_v3  ;;  %v90_v6 = vld [vmem:[%s2053_s26] sm:$0xff]  ;;  %v178_v8 = vld [vmem:[%s2052_s1 + $0x8] sm:$0xff]  ;;  %v367_v39 = vld [vmem:[%s2028_s4 + $0x78] sm:$0xff] }
  0x2a   :  { %1421 = vmatpush3.msra.mxu0 %v93_v2  ;;  %1431 = vmatprep.subr.mxu1 %v1547_v0  ;;  %v177_v9 = vld [vmem:[%s2052_s1] sm:$0xff]  ;;  %v269_v10 = vld [vmem:[%s2054_s21 + $0x38] sm:$0xff]  ;;  %v268_v11 = vld [vmem:[%s2054_s21 + $0x30] sm:$0xff] }
  0x2b   :  { %1422 = vmatprep.subr.mxu0 %v1547_v0  ;;  %1432 = vmatpush3.msra.mxu1 %v179_v7  ;;  %v267_v12 = vld [vmem:[%s2054_s21 + $0x28] sm:$0xff]  ;;  %v266_v13 = vld [vmem:[%s2054_s21 + $0x20] sm:$0xff]  ;;  %v265_v14 = vld [vmem:[%s2054_s21 + $0x18] sm:$0xff] }
  0x2c   :  { %1423 = vmatpush3.msra.mxu0 %v92_v4  ;;  %1433 = vmatprep.subr.mxu1 %v1547_v0  ;;  %v264_v20 = vld [vmem:[%s2054_s21 + $0x10] sm:$0xff]  ;;  %v263_v21 = vld [vmem:[%s2054_s21 + $0x8] sm:$0xff]  ;;  %v262_v22 = vld [vmem:[%s2054_s21] sm:$0xff] }
  0x2d   :  { %1424 = vmatprep.subr.mxu0 %v1547_v0  ;;  %1434 = vmatpush3.msra.mxu1 %v178_v8  ;;  %v369_v37 = vld [vmem:[%s2028_s4 + $0x88] sm:$0xff]  ;;  %v368_v38 = vld [vmem:[%s2028_s4 + $0x80] sm:$0xff]  ;;  %v366_v40 = vld [vmem:[%s2028_s4 + $0x70] sm:$0xff] }
  0x2e   :  { %1425 = vmatpush3.msra.mxu0 %v91_v5  ;;  %1435 = vmatprep.subr.mxu1 %v1547_v0  ;;  %v365_v41 = vld [vmem:[%s2028_s4 + $0x68] sm:$0xff]  ;;  %v364_v42 = vld [vmem:[%s2028_s4 + $0x60] sm:$0xff]  ;;  %v363_v43 = vld [vmem:[%s2028_s4 + $0x58] sm:$0xff] }
  0x2f   :  { %1427 = vmatmul.mubr.msk.f32.vlgmr.msra.gmra.mxu0 %vm102_vm1, %v90_v6  ;;  %1440 = vmatprep.subr.mxu0 %v1547_v0  ;;  %v362_v44 = vld [vmem:[%s2028_s4 + $0x50] sm:$0xff]  ;;  %v361_v45 = vld [vmem:[%s2028_s4 + $0x48] sm:$0xff]  ;;  %v360_v46 = vld [vmem:[%s2028_s4 + $0x40] sm:$0xff] }
  0x30   :  { %1456 = vmatprep.mubr.msk.f32.mxu0 %vm1548_vm0, %v1547_v0  ;;  %1436 = vmatpush3.msra.mxu1 %v177_v9  ;;  %v359_v47 = vld [vmem:[%s2028_s4 + $0x38] sm:$0xff]  ;;  %v358_v48 = vld [vmem:[%s2028_s4 + $0x30] sm:$0xff]  ;;  %v357_v49 = vld [vmem:[%s2028_s4 + $0x28] sm:$0xff] }
  0x31   :  { %1441 = vmatpush3.msra.mxu0 %v269_v10  ;;  %396 = vmatprep.subr.mxu1 %v383_v23  ;;  %v1341_v50 = vld [vmem:[%s2035_s11] ss:$0 sm:$0xff]  ;;  %v355_v56 = vld [vmem:[%s2028_s4 + $0x18] sm:$0xff]  ;;  %v354_v57 = vld [vmem:[%s2028_s4 + $0x10] sm:$0xff] }
  0x32   :  { %1442 = vmatprep.subr.mxu0 %v1547_v0  ;;  %v356_v55 = vld [vmem:[%s2028_s4 + $0x20] sm:$0xff]  ;;  %v353_v58 = vld [vmem:[%s2028_s4 + $0x8] sm:$0xff]  ;;  %v532_v61 = vld [vmem:[#allocation2 + $0x1f8] sm:$0xff] }
  0x33   :  { %1443 = vmatpush3.msra.mxu0 %v268_v11  ;;  %v352_v59 = vld [vmem:[%s2028_s4] sm:$0xff]  ;;  %v530_v60 = vld [vmem:[#allocation2 + $0x1e8] sm:$0xff] }
  0x34   :  { %1444 = vmatprep.subr.mxu0 %v1547_v0  ;;  %v529_v62 = vld [vmem:[#allocation2 + $0x1e0] sm:$0xff]  ;;  %v526_v63 = vld [vmem:[#allocation2 + $0x1c8] sm:$0xff] }
  0x35   :  { %1445 = vmatpush3.msra.mxu0 %v267_v12  ;;  %v525_v1 = vld [vmem:[#allocation2 + $0x1c0] sm:$0xff]  ;;  %v522_v2 = vld [vmem:[#allocation2 + $0x1a8] sm:$0xff] }
  0x36   :  { %1446 = vmatprep.subr.mxu0 %v1547_v0  ;;  %v521_v3 = vld [vmem:[#allocation2 + $0x1a0] sm:$0xff]  ;;  %v518_v4 = vld [vmem:[#allocation2 + $0x188] sm:$0xff] }
  0x37   :  { %1447 = vmatpush3.msra.mxu0 %v266_v13  ;;  %v517_v5 = vld [vmem:[#allocation2 + $0x180] sm:$0xff]  ;;  %v514_v6 = vld [vmem:[#allocation2 + $0x168] sm:$0xff] }
  0x38   :  { %1448 = vmatprep.subr.mxu0 %v1547_v0  ;;  %v513_v7 = vld [vmem:[#allocation2 + $0x160] sm:$0xff]  ;;  %v510_v8 = vld [vmem:[#allocation2 + $0x148] sm:$0xff] }
  0x39   :  { %1449 = vmatpush3.msra.mxu0 %v265_v14  ;;  %v509_v9 = vld [vmem:[#allocation2 + $0x140] sm:$0xff]  ;;  %v506_v10 = vld [vmem:[#allocation2 + $0x128] sm:$0xff] }
  0x3a   :  { %1450 = vmatprep.subr.mxu0 %v1547_v0  ;;  %v505_v11 = vld [vmem:[#allocation2 + $0x120] sm:$0xff]  ;;  %v502_v12 = vld [vmem:[#allocation2 + $0x108] sm:$0xff] }
  0x3b   :  { %1451 = vmatpush3.msra.mxu0 %v264_v20  ;;  %v501_v13 = vld [vmem:[#allocation2 + $0x100] sm:$0xff]  ;;  %v498_v14 = vld [vmem:[#allocation2 + $0xe8] sm:$0xff] }
  0x3c   :  { %1452 = vmatprep.subr.mxu0 %v1547_v0  ;;  %v486_v20 = vld [vmem:[#allocation2 + $0x88] sm:$0xff]  ;;  %v481_v23 = vld [vmem:[#allocation2 + $0x60] sm:$0xff] }
  0x3d   :  { %1453 = vmatpush3.msra.mxu0 %v263_v21  ;;  %v485_v21 = vld [vmem:[#allocation2 + $0x80] sm:$0xff] }
  0x3e   :  { %1454 = vmatprep.subr.mxu0 %v1547_v0 }
  0x3f   :  { %1455 = vmatpush3.msra.mxu0 %v262_v22  ;;  %v482_v22 = vld [vmem:[#allocation2 + $0x68] sm:$0xff] }
  0x40   :  { %619 = vmatprep.subr.mxu0 %v530_v60  ;;  %v528_v60 = vld [vmem:[#allocation2 + $0x1d8] sm:$0xff] }
  0xef   :  { %v172_v16 = vpop.f32.mrf.mxu0 }
  0xf0   :  { %v173_v17 = vadd.f32 %v1339_v15, %v172_v16  ;;  %v497_v15 = vld [vmem:[#allocation2 + $0xe0] sm:$0xff]  ;;  %v494_v16 = vld [vmem:[#allocation2 + $0xc8] sm:$0xff] }
  0xf1   :  { %v1428_v18 = vpop.f32.mrf.mxu0 }
  0xf2   :  { %v176_v19 = vmax.f32 %v173_v17, 0.0  ;;  %v493_v17 = vld [vmem:[#allocation2 + $0xc0] sm:$0xff]  ;;  %v490_v18 = vld [vmem:[#allocation2 + $0xa8] sm:$0xff] }
  0xf4   :  { %1438 = vmatmul.mubr.msk.f32.vlgmr.msra.gmra.mxu1 %vm102_vm1, %v176_v19  ;;  %v489_v19 = vld [vmem:[#allocation2 + $0xa0] sm:$0xff] }
  0xf5   :  { %460 = vmatprep.mubr.f32.mxu1 %v1547_v0  ;;  %397 = vmatpush1.msra.mxu1 %v382_v24  ;;  %v478_v24 = vld [vmem:[#allocation2 + $0x48] sm:$0xff] }
  0xf6   :  { %398 = vmatprep.subr.mxu1 %v381_v25  ;;  %v477_v25 = vld [vmem:[#allocation2 + $0x40] sm:$0xff] }
  0xf7   :  { %399 = vmatpush1.msra.mxu1 %v380_v26  ;;  %v474_v26 = vld [vmem:[#allocation2 + $0x28] sm:$0xff] }
  0xf8   :  { %400 = vmatprep.subr.mxu1 %v379_v27  ;;  %v473_v27 = vld [vmem:[#allocation2 + $0x20] sm:$0xff] }
  0xf9   :  { %401 = vmatpush1.msra.mxu1 %v378_v28  ;;  %v470_v28 = vld [vmem:[#allocation2 + $0x8] sm:$0xff] }
  0xfa   :  { %402 = vmatprep.subr.mxu1 %v377_v29  ;;  %v469_v29 = vld [vmem:[#allocation2] sm:$0xff] }
  0xfb   :  { %403 = vmatpush1.msra.mxu1 %v376_v30  ;;  %v594_v30 = vld [vmem:[#allocation2 + $0x3e8] sm:$0xff] }
  0xfc   :  { %404 = vmatprep.subr.mxu1 %v375_v31  ;;  %v593_v31 = vld [vmem:[#allocation2 + $0x3e0] sm:$0xff] }
  0xfd   :  { %405 = vmatpush1.msra.mxu1 %v374_v32  ;;  %v590_v32 = vld [vmem:[#allocation2 + $0x3c8] sm:$0xff] }
  0xfe   :  { %406 = vmatprep.subr.mxu1 %v373_v33  ;;  %v589_v33 = vld [vmem:[#allocation2 + $0x3c0] sm:$0xff] }
  0xff   :  { %407 = vmatpush1.msra.mxu1 %v372_v34  ;;  %v586_v34 = vld [vmem:[#allocation2 + $0x3a8] sm:$0xff] }
 0x100   :  { %408 = vmatprep.subr.mxu1 %v371_v35  ;;  %v585_v35 = vld [vmem:[#allocation2 + $0x3a0] sm:$0xff] }
 0x101   :  { %409 = vmatpush1.msra.mxu1 %v370_v36  ;;  %v582_v36 = vld [vmem:[#allocation2 + $0x388] sm:$0xff] }
 0x102   :  { %410 = vmatprep.subr.mxu1 %v369_v37  ;;  %v581_v37 = vld [vmem:[#allocation2 + $0x380] sm:$0xff] }
 0x103   :  { %411 = vmatpush1.msra.mxu1 %v368_v38  ;;  %v578_v38 = vld [vmem:[#allocation2 + $0x368] sm:$0xff] }
 0x104   :  { %412 = vmatprep.subr.mxu1 %v367_v39  ;;  %v577_v39 = vld [vmem:[#allocation2 + $0x360] sm:$0xff] }
 0x105   :  { %413 = vmatpush1.msra.mxu1 %v366_v40  ;;  %v574_v40 = vld [vmem:[#allocation2 + $0x348] sm:$0xff] }
 0x106   :  { %414 = vmatprep.subr.mxu1 %v365_v41  ;;  %v573_v41 = vld [vmem:[#allocation2 + $0x340] sm:$0xff] }
 0x107   :  { %415 = vmatpush1.msra.mxu1 %v364_v42  ;;  %v570_v42 = vld [vmem:[#allocation2 + $0x328] sm:$0xff] }
 0x108   :  { %416 = vmatprep.subr.mxu1 %v363_v43  ;;  %v569_v43 = vld [vmem:[#allocation2 + $0x320] sm:$0xff] }
 0x109   :  { %417 = vmatpush1.msra.mxu1 %v362_v44  ;;  %v566_v44 = vld [vmem:[#allocation2 + $0x308] sm:$0xff] }
 0x10a   :  { %418 = vmatprep.subr.mxu1 %v361_v45  ;;  %v565_v45 = vld [vmem:[#allocation2 + $0x300] sm:$0xff] }
 0x10b   :  { %419 = vmatpush1.msra.mxu1 %v360_v46  ;;  %v562_v46 = vld [vmem:[#allocation2 + $0x2e8] sm:$0xff] }
 0x10c   :  { %420 = vmatprep.subr.mxu1 %v359_v47  ;;  %v561_v47 = vld [vmem:[#allocation2 + $0x2e0] sm:$0xff] }
 0x10d   :  { %421 = vmatpush1.msra.mxu1 %v358_v48  ;;  %v558_v48 = vld [vmem:[#allocation2 + $0x2c8] sm:$0xff] }
 0x10e   :  { %422 = vmatprep.subr.mxu1 %v357_v49  ;;  %v557_v49 = vld [vmem:[#allocation2 + $0x2c0] sm:$0xff] }
 0x10f   :  { %423 = vmatpush1.msra.mxu1 %v356_v55 }
 0x110   :  { %424 = vmatprep.subr.mxu1 %v355_v56 }
 0x111   :  { %425 = vmatpush1.msra.mxu1 %v354_v57 }
 0x112   :  { %426 = vmatprep.subr.mxu1 %v353_v58 }
 0x113   :  { %427 = vmatpush1.msra.mxu1 %v352_v59  ;;  %v531_v59 = vld [vmem:[#allocation2 + $0x1f0] sm:$0xff] }
 0x114   :  { %690 = vmatprep.subr.mxu1 %v532_v61  ;;  %v527_v61 = vld [vmem:[#allocation2 + $0x1d0] sm:$0xff] }
 0x1b4   :  { %v257_v51 = vpop.f32.mrf.mxu1 }
 0x1b5   :  { %v258_v52 = vadd.f32 %v1341_v50, %v257_v51  ;;  %v554_v50 = vld [vmem:[#allocation2 + $0x2a8] sm:$0xff]  ;;  %v553_v51 = vld [vmem:[#allocation2 + $0x2a0] sm:$0xff] }
 0x1b6   :  { %v1439_v53 = vpop.f32.mrf.mxu1 }
 0x1b7   :  { %v261_v54 = vmax.f32 %v258_v52, 0.0  ;;  %v550_v52 = vld [vmem:[#allocation2 + $0x288] sm:$0xff]  ;;  %v549_v53 = vld [vmem:[#allocation2 + $0x280] sm:$0xff] }
 0x1b9   :  { %1457 = vmatmul.mubr.msk.f32.vlgmr.msra.gmra.mxu0 %vm277_vm2, %v261_v54  ;;  %v1343_v54 = vld [vmem:[%s2036_s12] ss:$0 sm:$0xff] }
 0x1ba   :  { %620 = vmatpush1.msra.mxu0 %v529_v62  ;;  %v524_v62 = vld [vmem:[#allocation2 + $0x1b8] sm:$0xff] }
 0x1bb   :  { %621 = vmatprep.subr.mxu0 %v526_v63  ;;  %v523_v63 = vld [vmem:[#allocation2 + $0x1b0] sm:$0xff] }
 0x1bc   :  { %622 = vmatpush1.msra.mxu0 %v525_v1  ;;  %v520_v1 = vld [vmem:[#allocation2 + $0x198] sm:$0xff] }
 0x1bd   :  { %623 = vmatprep.subr.mxu0 %v522_v2  ;;  %v519_v2 = vld [vmem:[#allocation2 + $0x190] sm:$0xff] }
 0x1be   :  { %624 = vmatpush1.msra.mxu0 %v521_v3  ;;  %v516_v3 = vld [vmem:[#allocation2 + $0x178] sm:$0xff] }
 0x1bf   :  { %625 = vmatprep.subr.mxu0 %v518_v4  ;;  %v515_v4 = vld [vmem:[#allocation2 + $0x170] sm:$0xff] }
 0x1c0   :  { %626 = vmatpush1.msra.mxu0 %v517_v5  ;;  %v512_v5 = vld [vmem:[#allocation2 + $0x158] sm:$0xff] }
 0x1c1   :  { %627 = vmatprep.subr.mxu0 %v514_v6  ;;  %v511_v6 = vld [vmem:[#allocation2 + $0x150] sm:$0xff] }
 0x1c2   :  { %628 = vmatpush1.msra.mxu0 %v513_v7  ;;  %v508_v7 = vld [vmem:[#allocation2 + $0x138] sm:$0xff] }
 0x1c3   :  { %629 = vmatprep.subr.mxu0 %v510_v8  ;;  %v507_v8 = vld [vmem:[#allocation2 + $0x130] sm:$0xff] }
 0x1c4   :  { %630 = vmatpush1.msra.mxu0 %v509_v9  ;;  %v504_v9 = vld [vmem:[#allocation2 + $0x118] sm:$0xff] }
 0x1c5   :  { %631 = vmatprep.subr.mxu0 %v506_v10  ;;  %v503_v10 = vld [vmem:[#allocation2 + $0x110] sm:$0xff] }
 0x1c6   :  { %632 = vmatpush1.msra.mxu0 %v505_v11  ;;  %v500_v11 = vld [vmem:[#allocation2 + $0xf8] sm:$0xff] }
 0x1c7   :  { %633 = vmatprep.subr.mxu0 %v502_v12  ;;  %v499_v12 = vld [vmem:[#allocation2 + $0xf0] sm:$0xff] }
 0x1c8   :  { %634 = vmatpush1.msra.mxu0 %v501_v13  ;;  %v496_v13 = vld [vmem:[#allocation2 + $0xd8] sm:$0xff] }
 0x1c9   :  { %635 = vmatprep.subr.mxu0 %v498_v14  ;;  %v495_v14 = vld [vmem:[#allocation2 + $0xd0] sm:$0xff] }
 0x1ca   :  { %636 = vmatpush1.msra.mxu0 %v497_v15  ;;  %v492_v15 = vld [vmem:[#allocation2 + $0xb8] sm:$0xff] }
 0x1cb   :  { %637 = vmatprep.subr.mxu0 %v494_v16  ;;  %v491_v16 = vld [vmem:[#allocation2 + $0xb0] sm:$0xff] }
 0x1cc   :  { %638 = vmatpush1.msra.mxu0 %v493_v17  ;;  %v488_v17 = vld [vmem:[#allocation2 + $0x98] sm:$0xff] }
 0x1cd   :  { %639 = vmatprep.subr.mxu0 %v490_v18  ;;  %v487_v18 = vld [vmem:[#allocation2 + $0x90] sm:$0xff] }
 0x1ce   :  { %640 = vmatpush1.msra.mxu0 %v489_v19  ;;  %v484_v19 = vld [vmem:[#allocation2 + $0x78] sm:$0xff] }
 0x1cf   :  { %641 = vmatprep.subr.mxu0 %v486_v20  ;;  %v483_v20 = vld [vmem:[#allocation2 + $0x70] sm:$0xff] }
 0x1d0   :  { %642 = vmatpush1.msra.mxu0 %v485_v21  ;;  %v480_v21 = vld [vmem:[#allocation2 + $0x58] sm:$0xff] }
 0x1d1   :  { %643 = vmatprep.subr.mxu0 %v482_v22  ;;  %v479_v22 = vld [vmem:[#allocation2 + $0x50] sm:$0xff] }
 0x1d2   :  { %644 = vmatpush1.msra.mxu0 %v481_v23  ;;  %v476_v23 = vld [vmem:[#allocation2 + $0x38] sm:$0xff] }
 0x1d3   :  { %645 = vmatprep.subr.mxu0 %v478_v24  ;;  %v475_v24 = vld [vmem:[#allocation2 + $0x30] sm:$0xff] }
 0x1d4   :  { %646 = vmatpush1.msra.mxu0 %v477_v25  ;;  %v472_v25 = vld [vmem:[#allocation2 + $0x18] sm:$0xff] }
 0x1d5   :  { %647 = vmatprep.subr.mxu0 %v474_v26  ;;  %v471_v26 = vld [vmem:[#allocation2 + $0x10] sm:$0xff] }
 0x1d6   :  { %648 = vmatpush1.msra.mxu0 %v473_v27  ;;  %v596_v27 = vld [vmem:[#allocation2 + $0x3f8] sm:$0xff] }
 0x1d7   :  { %649 = vmatprep.subr.mxu0 %v470_v28  ;;  %v595_v28 = vld [vmem:[#allocation2 + $0x3f0] sm:$0xff] }
 0x1d8   :  { %650 = vmatpush1.msra.mxu0 %v469_v29  ;;  %v592_v29 = vld [vmem:[#allocation2 + $0x3d8] sm:$0xff] }
 0x1d9   :  { %651 = vmatprep.subr.mxu0 %v594_v30  ;;  %v591_v30 = vld [vmem:[#allocation2 + $0x3d0] sm:$0xff] }
 0x1da   :  { %652 = vmatpush2.msra.mxu0 %v593_v31  ;;  %v588_v31 = vld [vmem:[#allocation2 + $0x3b8] sm:$0xff] }
 0x1db   :  { %653 = vmatprep.subr.mxu0 %v590_v32  ;;  %v587_v32 = vld [vmem:[#allocation2 + $0x3b0] sm:$0xff] }
 0x1dc   :  { %654 = vmatpush2.msra.mxu0 %v589_v33  ;;  %v584_v33 = vld [vmem:[#allocation2 + $0x398] sm:$0xff] }
 0x1dd   :  { %655 = vmatprep.subr.mxu0 %v586_v34  ;;  %v583_v34 = vld [vmem:[#allocation2 + $0x390] sm:$0xff] }
 0x1de   :  { %656 = vmatpush2.msra.mxu0 %v585_v35  ;;  %v580_v35 = vld [vmem:[#allocation2 + $0x378] sm:$0xff] }
 0x1df   :  { %657 = vmatprep.subr.mxu0 %v582_v36  ;;  %v579_v36 = vld [vmem:[#allocation2 + $0x370] sm:$0xff] }
 0x1e0   :  { %658 = vmatpush2.msra.mxu0 %v581_v37  ;;  %v576_v37 = vld [vmem:[#allocation2 + $0x358] sm:$0xff] }
 0x1e1   :  { %659 = vmatprep.subr.mxu0 %v578_v38  ;;  %v575_v38 = vld [vmem:[#allocation2 + $0x350] sm:$0xff] }
 0x1e2   :  { %660 = vmatpush2.msra.mxu0 %v577_v39  ;;  %v572_v39 = vld [vmem:[#allocation2 + $0x338] sm:$0xff] }
 0x1e3   :  { %661 = vmatprep.subr.mxu0 %v574_v40  ;;  %v571_v40 = vld [vmem:[#allocation2 + $0x330] sm:$0xff] }
 0x1e4   :  { %662 = vmatpush2.msra.mxu0 %v573_v41  ;;  %v568_v41 = vld [vmem:[#allocation2 + $0x318] sm:$0xff] }
 0x1e5   :  { %663 = vmatprep.subr.mxu0 %v570_v42  ;;  %v567_v42 = vld [vmem:[#allocation2 + $0x310] sm:$0xff] }
 0x1e6   :  { %664 = vmatpush2.msra.mxu0 %v569_v43  ;;  %v564_v43 = vld [vmem:[#allocation2 + $0x2f8] sm:$0xff] }
 0x1e7   :  { %665 = vmatprep.subr.mxu0 %v566_v44  ;;  %v563_v44 = vld [vmem:[#allocation2 + $0x2f0] sm:$0xff] }
 0x1e8   :  { %666 = vmatpush2.msra.mxu0 %v565_v45  ;;  %v560_v45 = vld [vmem:[#allocation2 + $0x2d8] sm:$0xff] }
 0x1e9   :  { %667 = vmatprep.subr.mxu0 %v562_v46  ;;  %v559_v46 = vld [vmem:[#allocation2 + $0x2d0] sm:$0xff] }
 0x1ea   :  { %668 = vmatpush2.msra.mxu0 %v561_v47  ;;  %v556_v47 = vld [vmem:[#allocation2 + $0x2b8] sm:$0xff] }
 0x1eb   :  { %669 = vmatprep.subr.mxu0 %v558_v48  ;;  %v555_v48 = vld [vmem:[#allocation2 + $0x2b0] sm:$0xff] }
 0x1ec   :  { %670 = vmatpush2.msra.mxu0 %v557_v49  ;;  %v552_v49 = vld [vmem:[#allocation2 + $0x298] sm:$0xff] }
 0x1ed   :  { %671 = vmatprep.subr.mxu0 %v554_v50  ;;  %v551_v50 = vld [vmem:[#allocation2 + $0x290] sm:$0xff] }
 0x1ee   :  { %672 = vmatpush2.msra.mxu0 %v553_v51  ;;  %v546_v51 = vld [vmem:[#allocation2 + $0x268] sm:$0xff] }
 0x1ef   :  { %673 = vmatprep.subr.mxu0 %v550_v52  ;;  %v548_v52 = vld [vmem:[#allocation2 + $0x278] sm:$0xff] }
 0x1f0   :  { %674 = vmatpush2.msra.mxu0 %v549_v53  ;;  %v545_v53 = vld [vmem:[#allocation2 + $0x260] sm:$0xff] }
 0x1f1   :  { %675 = vmatprep.subr.mxu0 %v546_v51  ;;  %v779_v51 = vld [vmem:[#allocation4 + $0x70] sm:$0xff] }
 0x1f2   :  { %676 = vmatpush2.msra.mxu0 %v545_v53  ;;  %v778_v53 = vld [vmem:[#allocation4 + $0x68] sm:$0xff] }
 0x279   :  { %v347_v55 = vpop.f32.mrf.mxu0 }
 0x27a   :  { %v348_v56 = vadd.f32 %v1343_v54, %v347_v55  ;;  %v547_v54 = vld [vmem:[#allocation2 + $0x270] sm:$0xff]  ;;  %v542_v55 = vld [vmem:[#allocation2 + $0x248] sm:$0xff] }
 0x27b   :  { %v1458_v57 = vpop.f32.mrf.mxu0  ;;  %677 = vmatprep.subr.mxu0 %v542_v55  ;;  %v777_v55 = vld [vmem:[#allocation4 + $0x60] sm:$0xff] }
 0x27c   :  { %v351_v58 = vmax.f32 %v348_v56, 0.0  ;;  %v544_v56 = vld [vmem:[#allocation2 + $0x258] sm:$0xff]  ;;  %v541_v57 = vld [vmem:[#allocation2 + $0x240] sm:$0xff] }
 0x27d   :  { %678 = vmatpush2.msra.mxu0 %v541_v57  ;;  %v776_v57 = vld [vmem:[#allocation4 + $0x58] sm:$0xff] }
 0x27e   :  { %461 = vmatmul.mubr.f32.vlgmr.msra.gmra.mxu1 %v351_v58  ;;  %v543_v58 = vld [vmem:[#allocation2 + $0x250] sm:$0xff] }
 0x27f   :  { %691 = vmatpush1.msra.mxu1 %v531_v59  ;;  %v538_v59 = vld [vmem:[#allocation2 + $0x228] sm:$0xff] }
 0x280   :  { %692 = vmatprep.subr.mxu1 %v528_v60  ;;  %v540_v60 = vld [vmem:[#allocation2 + $0x238] sm:$0xff]  ;;  %679 = vmatprep.subr.mxu0 %v538_v59  ;;  %v775_v59 = vld [vmem:[#allocation4 + $0x50] sm:$0xff] }
 0x281   :  { %693 = vmatpush1.msra.mxu1 %v527_v61  ;;  %v537_v61 = vld [vmem:[#allocation2 + $0x220] sm:$0xff] }
 0x282   :  { %694 = vmatprep.subr.mxu1 %v524_v62  ;;  %v539_v62 = vld [vmem:[#allocation2 + $0x230] sm:$0xff]  ;;  %680 = vmatpush2.msra.mxu0 %v537_v61  ;;  %v774_v61 = vld [vmem:[#allocation4 + $0x48] sm:$0xff] }
 0x283   :  { %695 = vmatpush1.msra.mxu1 %v523_v63  ;;  %v534_v63 = vld [vmem:[#allocation2 + $0x208] sm:$0xff] }
 0x284   :  { %696 = vmatprep.subr.mxu1 %v520_v1  ;;  %v536_v1 = vld [vmem:[#allocation2 + $0x218] sm:$0xff]  ;;  %681 = vmatprep.subr.mxu0 %v534_v63  ;;  %v773_v63 = vld [vmem:[#allocation4 + $0x40] sm:$0xff] }
 0x285   :  { %697 = vmatpush1.msra.mxu1 %v519_v2  ;;  %v533_v2 = vld [vmem:[#allocation2 + $0x200] sm:$0xff] }
 0x286   :  { %698 = vmatprep.subr.mxu1 %v516_v3  ;;  %v535_v3 = vld [vmem:[#allocation2 + $0x210] sm:$0xff]  ;;  %682 = vmatpush2.msra.mxu0 %v533_v2  ;;  %v772_v2 = vld [vmem:[#allocation4 + $0x38] sm:$0xff] }
 0x287   :  { %699 = vmatpush1.msra.mxu1 %v515_v4  ;;  %v796_v4 = vld [vmem:[#allocation4 + $0xf8] sm:$0xff] }
 0x288   :  { %700 = vmatprep.subr.mxu1 %v512_v5  ;;  %v860_v5 = vld [vmem:[#allocation4 + $0x2f8] sm:$0xff]  ;;  %905 = vmatprep.subr.mxu0 %v796_v4  ;;  %v771_v4 = vld [vmem:[#allocation4 + $0x30] sm:$0xff] }
 0x289   :  { %701 = vmatpush1.msra.mxu1 %v511_v6  ;;  %v386_v6 = vlaneseq }
 0x28a   :  { %702 = vmatprep.subr.mxu1 %v508_v7 }
 0x28b   :  { %703 = vmatpush1.msra.mxu1 %v507_v8  ;;  %v1837_v7 = vshrl.u32 %v386_v6, 7  ;;  %v770_v6 = vld [vmem:[#allocation4 + $0x28] sm:$0xff] }
 0x28c   :  { %704 = vmatprep.subr.mxu1 %v504_v9  ;;  %v384_v9 = vld [vmem:[%s2037_s13] sm:$0x3] }
 0x28d   :  { %705 = vmatpush1.msra.mxu1 %v503_v10  ;;  %v1840_v8 = vsub.s32 0, %v1837_v7  ;;  %v1846_v10 = vsub.s32 1, %v1837_v7 }
 0x28e   :  { %706 = vmatprep.subr.mxu1 %v500_v11 }
 0x28f   :  { %707 = vmatpush1.msra.mxu1 %v499_v12  ;;  %v389_v11 = vrot.slane %v384_v9, %v1840_v8  ;;  %v393_v12 = vrot.slane %v384_v9, %v1846_v10  ;;  %v834_v9 = vld [vmem:[#allocation4 + $0x228] sm:$0xff] }
 0x290   :  { %708 = vmatprep.subr.mxu1 %v496_v13 }
 0x291   :  { %709 = vmatpush1.msra.mxu1 %v495_v14 }
 0x292   :  { %710 = vmatprep.subr.mxu1 %v492_v15 }
 0x293   :  { %711 = vmatpush1.msra.mxu1 %v491_v16 }
 0x294   :  { %712 = vmatprep.subr.mxu1 %v488_v17 }
 0x295   :  { %713 = vmatpush1.msra.mxu1 %v487_v18 }
 0x296   :  { %714 = vmatprep.subr.mxu1 %v484_v19  ;;  %v795_v19 = vld [vmem:[#allocation4 + $0xf0] sm:$0xff] }
 0x297   :  { %715 = vmatpush1.msra.mxu1 %v483_v20  ;;  %v859_v20 = vld [vmem:[#allocation4 + $0x2f0] sm:$0xff] }
 0x298   :  { %716 = vmatprep.subr.mxu1 %v480_v21  ;;  %v794_v21 = vld [vmem:[#allocation4 + $0xe8] sm:$0xff] }
 0x299   :  { %717 = vmatpush1.msra.mxu1 %v479_v22  ;;  %v858_v22 = vld [vmem:[#allocation4 + $0x2e8] sm:$0xff] }
 0x29a   :  { %718 = vmatprep.subr.mxu1 %v476_v23  ;;  %v793_v23 = vld [vmem:[#allocation4 + $0xe0] sm:$0xff] }
 0x29b   :  { %719 = vmatpush1.msra.mxu1 %v475_v24  ;;  %v857_v24 = vld [vmem:[#allocation4 + $0x2e0] sm:$0xff] }
 0x29c   :  { %720 = vmatprep.subr.mxu1 %v472_v25  ;;  %v792_v25 = vld [vmem:[#allocation4 + $0xd8] sm:$0xff] }
 0x29d   :  { %721 = vmatpush1.msra.mxu1 %v471_v26  ;;  %v856_v26 = vld [vmem:[#allocation4 + $0x2d8] sm:$0xff] }
 0x29e   :  { %722 = vmatprep.subr.mxu1 %v596_v27  ;;  %v791_v27 = vld [vmem:[#allocation4 + $0xd0] sm:$0xff] }
 0x29f   :  { %723 = vmatpush2.msra.mxu1 %v595_v28  ;;  %v855_v28 = vld [vmem:[#allocation4 + $0x2d0] sm:$0xff] }
 0x2a0   :  { %724 = vmatprep.subr.mxu1 %v592_v29  ;;  %v790_v29 = vld [vmem:[#allocation4 + $0xc8] sm:$0xff] }
 0x2a1   :  { %725 = vmatpush2.msra.mxu1 %v591_v30  ;;  %v854_v30 = vld [vmem:[#allocation4 + $0x2c8] sm:$0xff] }
 0x2a2   :  { %726 = vmatprep.subr.mxu1 %v588_v31  ;;  %v789_v31 = vld [vmem:[#allocation4 + $0xc0] sm:$0xff] }
 0x2a3   :  { %727 = vmatpush2.msra.mxu1 %v587_v32  ;;  %v853_v32 = vld [vmem:[#allocation4 + $0x2c0] sm:$0xff] }
 0x2a4   :  { %728 = vmatprep.subr.mxu1 %v584_v33  ;;  %v788_v33 = vld [vmem:[#allocation4 + $0xb8] sm:$0xff] }
 0x2a5   :  { %729 = vmatpush2.msra.mxu1 %v583_v34  ;;  %v852_v34 = vld [vmem:[#allocation4 + $0x2b8] sm:$0xff] }
 0x2a6   :  { %730 = vmatprep.subr.mxu1 %v580_v35  ;;  %v787_v35 = vld [vmem:[#allocation4 + $0xb0] sm:$0xff] }
 0x2a7   :  { %731 = vmatpush2.msra.mxu1 %v579_v36  ;;  %v851_v36 = vld [vmem:[#allocation4 + $0x2b0] sm:$0xff] }
 0x2a8   :  { %732 = vmatprep.subr.mxu1 %v576_v37  ;;  %v786_v37 = vld [vmem:[#allocation4 + $0xa8] sm:$0xff] }
 0x2a9   :  { %733 = vmatpush2.msra.mxu1 %v575_v38  ;;  %v850_v38 = vld [vmem:[#allocation4 + $0x2a8] sm:$0xff] }
 0x2aa   :  { %734 = vmatprep.subr.mxu1 %v572_v39  ;;  %v785_v39 = vld [vmem:[#allocation4 + $0xa0] sm:$0xff] }
 0x2ab   :  { %735 = vmatpush2.msra.mxu1 %v571_v40  ;;  %v849_v40 = vld [vmem:[#allocation4 + $0x2a0] sm:$0xff] }
 0x2ac   :  { %736 = vmatprep.subr.mxu1 %v568_v41  ;;  %v784_v41 = vld [vmem:[#allocation4 + $0x98] sm:$0xff] }
 0x2ad   :  { %737 = vmatpush2.msra.mxu1 %v567_v42  ;;  %v848_v42 = vld [vmem:[#allocation4 + $0x298] sm:$0xff] }
 0x2ae   :  { %738 = vmatprep.subr.mxu1 %v564_v43  ;;  %v783_v43 = vld [vmem:[#allocation4 + $0x90] sm:$0xff] }
 0x2af   :  { %739 = vmatpush2.msra.mxu1 %v563_v44  ;;  %v847_v44 = vld [vmem:[#allocation4 + $0x290] sm:$0xff] }
 0x2b0   :  { %740 = vmatprep.subr.mxu1 %v560_v45  ;;  %v782_v45 = vld [vmem:[#allocation4 + $0x88] sm:$0xff] }
 0x2b1   :  { %741 = vmatpush2.msra.mxu1 %v559_v46  ;;  %v846_v46 = vld [vmem:[#allocation4 + $0x288] sm:$0xff] }
 0x2b2   :  { %742 = vmatprep.subr.mxu1 %v556_v47  ;;  %v781_v47 = vld [vmem:[#allocation4 + $0x80] sm:$0xff] }
 0x2b3   :  { %743 = vmatpush2.msra.mxu1 %v555_v48  ;;  %v845_v48 = vld [vmem:[#allocation4 + $0x280] sm:$0xff] }
 0x2b4   :  { %744 = vmatprep.subr.mxu1 %v552_v49  ;;  %v780_v49 = vld [vmem:[#allocation4 + $0x78] sm:$0xff] }
 0x2b5   :  { %745 = vmatpush2.msra.mxu1 %v551_v50  ;;  %v844_v50 = vld [vmem:[#allocation4 + $0x278] sm:$0xff] }
 0x2b6   :  { %746 = vmatprep.subr.mxu1 %v548_v52  ;;  %v843_v52 = vld [vmem:[#allocation4 + $0x270] sm:$0xff] }
 0x2b7   :  { %747 = vmatpush2.msra.mxu1 %v547_v54  ;;  %v842_v54 = vld [vmem:[#allocation4 + $0x268] sm:$0xff] }
 0x2b8   :  { %748 = vmatprep.subr.mxu1 %v544_v56  ;;  %v841_v56 = vld [vmem:[#allocation4 + $0x260] sm:$0xff] }
 0x2b9   :  { %749 = vmatpush2.msra.mxu1 %v543_v58  ;;  %v840_v58 = vld [vmem:[#allocation4 + $0x258] sm:$0xff] }
 0x2ba   :  { %750 = vmatprep.subr.mxu1 %v540_v60  ;;  %v839_v60 = vld [vmem:[#allocation4 + $0x250] sm:$0xff] }
 0x2bb   :  { %751 = vmatpush2.msra.mxu1 %v539_v62  ;;  %v838_v62 = vld [vmem:[#allocation4 + $0x248] sm:$0xff] }
 0x2bc   :  { %752 = vmatprep.subr.mxu1 %v536_v1  ;;  %v837_v1 = vld [vmem:[#allocation4 + $0x240] sm:$0xff] }
 0x2bd   :  { %753 = vmatpush2.msra.mxu1 %v535_v3  ;;  %v836_v3 = vld [vmem:[#allocation4 + $0x238] sm:$0xff] }
 0x2be   :  { %976 = vmatprep.subr.mxu1 %v860_v5  ;;  %v835_v5 = vld [vmem:[#allocation4 + $0x230] sm:$0xff] }
 0x33e   :  { %v462_v13 = vpop.f32.mrf.mxu1 }
 0x33f   :  { %v463_v14 = vadd.f32 %v462_v13, %v389_v11  ;;  %v769_v11 = vld [vmem:[#allocation4 + $0x20] sm:$0xff]  ;;  %v768_v13 = vld [vmem:[#allocation4 + $0x18] sm:$0xff] }
 0x340   :  { %v464_v15 = vpop.f32.mrf.mxu1 }
 0x341   :  { %v465_v16 = vadd.f32 %v464_v15, %v393_v12  ;;  %v467_v18 = vmax.f32 %v463_v14, 0.0  ;;  %v833_v12 = vld [vmem:[#allocation4 + $0x220] sm:$0xff]  ;;  %v832_v14 = vld [vmem:[#allocation4 + $0x218] sm:$0xff]  ;;  %v767_v15 = vld [vmem:[#allocation4 + $0x10] sm:$0xff] }
 0x343   :  { %v468_v17 = vmax.f32 %v465_v16, 0.0  ;;  %v831_v16 = vld [vmem:[#allocation4 + $0x210] sm:$0xff] }
 0x345   :  { %683 = vmatprep.mubr.f32.mxu0 %v468_v17  ;;  %754 = vmatprep.mubr.f32.mxu1 %v468_v17  ;;  %v766_v17 = vld [vmem:[#allocation4 + $0x8] sm:$0xff] }
 0x346   :  { %684 = vmatmul.mubr.f32.vlgmr.msra.gmra.mxu0 %v467_v18  ;;  %755 = vmatmul.mubr.f32.vlgmr.msra.gmra.mxu1 %v467_v18  ;;  %v830_v18 = vld [vmem:[#allocation4 + $0x208] sm:$0xff] }
 0x347   :  { %906 = vmatpush1.msra.mxu0 %v795_v19  ;;  %977 = vmatpush1.msra.mxu1 %v859_v20  ;;  %v765_v19 = vld [vmem:[#allocation4] sm:$0xff] }
 0x348   :  { %907 = vmatprep.subr.mxu0 %v794_v21  ;;  %978 = vmatprep.subr.mxu1 %v858_v22  ;;  %v829_v20 = vld [vmem:[#allocation4 + $0x200] sm:$0xff]  ;;  %v828_v21 = vld [vmem:[#allocation4 + $0x1f8] sm:$0xff] }
 0x349   :  { %908 = vmatpush1.msra.mxu0 %v793_v23  ;;  %979 = vmatpush1.msra.mxu1 %v857_v24  ;;  %v892_v22 = vld [vmem:[#allocation4 + $0x3f8] sm:$0xff]  ;;  %v827_v23 = vld [vmem:[#allocation4 + $0x1f0] sm:$0xff] }
 0x34a   :  { %909 = vmatprep.subr.mxu0 %v792_v25  ;;  %980 = vmatprep.subr.mxu1 %v856_v26  ;;  %v891_v24 = vld [vmem:[#allocation4 + $0x3f0] sm:$0xff]  ;;  %v826_v25 = vld [vmem:[#allocation4 + $0x1e8] sm:$0xff] }
 0x34b   :  { %910 = vmatpush1.msra.mxu0 %v791_v27  ;;  %981 = vmatpush1.msra.mxu1 %v855_v28  ;;  %v890_v26 = vld [vmem:[#allocation4 + $0x3e8] sm:$0xff]  ;;  %v825_v27 = vld [vmem:[#allocation4 + $0x1e0] sm:$0xff] }
 0x34c   :  { %911 = vmatprep.subr.mxu0 %v790_v29  ;;  %982 = vmatprep.subr.mxu1 %v854_v30  ;;  %v889_v28 = vld [vmem:[#allocation4 + $0x3e0] sm:$0xff]  ;;  %v824_v29 = vld [vmem:[#allocation4 + $0x1d8] sm:$0xff] }
 0x34d   :  { %912 = vmatpush1.msra.mxu0 %v789_v31  ;;  %983 = vmatpush1.msra.mxu1 %v853_v32  ;;  %v888_v30 = vld [vmem:[#allocation4 + $0x3d8] sm:$0xff]  ;;  %v823_v31 = vld [vmem:[#allocation4 + $0x1d0] sm:$0xff] }
 0x34e   :  { %913 = vmatprep.subr.mxu0 %v788_v33  ;;  %984 = vmatprep.subr.mxu1 %v852_v34  ;;  %v887_v32 = vld [vmem:[#allocation4 + $0x3d0] sm:$0xff]  ;;  %v822_v33 = vld [vmem:[#allocation4 + $0x1c8] sm:$0xff] }
 0x34f   :  { %914 = vmatpush1.msra.mxu0 %v787_v35  ;;  %985 = vmatpush1.msra.mxu1 %v851_v36  ;;  %v886_v34 = vld [vmem:[#allocation4 + $0x3c8] sm:$0xff]  ;;  %v821_v35 = vld [vmem:[#allocation4 + $0x1c0] sm:$0xff] }
 0x350   :  { %915 = vmatprep.subr.mxu0 %v786_v37  ;;  %986 = vmatprep.subr.mxu1 %v850_v38  ;;  %v885_v36 = vld [vmem:[#allocation4 + $0x3c0] sm:$0xff]  ;;  %v820_v37 = vld [vmem:[#allocation4 + $0x1b8] sm:$0xff] }
 0x351   :  { %916 = vmatpush1.msra.mxu0 %v785_v39  ;;  %987 = vmatpush1.msra.mxu1 %v849_v40  ;;  %v884_v38 = vld [vmem:[#allocation4 + $0x3b8] sm:$0xff]  ;;  %v819_v39 = vld [vmem:[#allocation4 + $0x1b0] sm:$0xff] }
 0x352   :  { %917 = vmatprep.subr.mxu0 %v784_v41  ;;  %988 = vmatprep.subr.mxu1 %v848_v42  ;;  %v883_v40 = vld [vmem:[#allocation4 + $0x3b0] sm:$0xff]  ;;  %v818_v41 = vld [vmem:[#allocation4 + $0x1a8] sm:$0xff] }
 0x353   :  { %918 = vmatpush1.msra.mxu0 %v783_v43  ;;  %989 = vmatpush1.msra.mxu1 %v847_v44  ;;  %v882_v42 = vld [vmem:[#allocation4 + $0x3a8] sm:$0xff]  ;;  %v817_v43 = vld [vmem:[#allocation4 + $0x1a0] sm:$0xff] }
 0x354   :  { %919 = vmatprep.subr.mxu0 %v782_v45  ;;  %990 = vmatprep.subr.mxu1 %v846_v46  ;;  %v881_v44 = vld [vmem:[#allocation4 + $0x3a0] sm:$0xff]  ;;  %v816_v45 = vld [vmem:[#allocation4 + $0x198] sm:$0xff] }
 0x355   :  { %920 = vmatpush1.msra.mxu0 %v781_v47  ;;  %991 = vmatpush1.msra.mxu1 %v845_v48  ;;  %v880_v46 = vld [vmem:[#allocation4 + $0x398] sm:$0xff]  ;;  %v815_v47 = vld [vmem:[#allocation4 + $0x190] sm:$0xff] }
 0x356   :  { %921 = vmatprep.subr.mxu0 %v780_v49  ;;  %992 = vmatprep.subr.mxu1 %v844_v50  ;;  %v879_v48 = vld [vmem:[#allocation4 + $0x390] sm:$0xff]  ;;  %v814_v49 = vld [vmem:[#allocation4 + $0x188] sm:$0xff] }
 0x357   :  { %922 = vmatpush1.msra.mxu0 %v779_v51  ;;  %993 = vmatpush1.msra.mxu1 %v843_v52  ;;  %v878_v50 = vld [vmem:[#allocation4 + $0x388] sm:$0xff]  ;;  %v813_v51 = vld [vmem:[#allocation4 + $0x180] sm:$0xff] }
 0x358   :  { %923 = vmatprep.subr.mxu0 %v778_v53  ;;  %994 = vmatprep.subr.mxu1 %v842_v54  ;;  %v877_v52 = vld [vmem:[#allocation4 + $0x380] sm:$0xff]  ;;  %v812_v53 = vld [vmem:[#allocation4 + $0x178] sm:$0xff] }
 0x359   :  { %924 = vmatpush1.msra.mxu0 %v777_v55  ;;  %995 = vmatpush1.msra.mxu1 %v841_v56  ;;  %v876_v54 = vld [vmem:[#allocation4 + $0x378] sm:$0xff]  ;;  %v811_v55 = vld [vmem:[#allocation4 + $0x170] sm:$0xff] }
 0x35a   :  { %925 = vmatprep.subr.mxu0 %v776_v57  ;;  %996 = vmatprep.subr.mxu1 %v840_v58  ;;  %v875_v56 = vld [vmem:[#allocation4 + $0x370] sm:$0xff]  ;;  %v810_v57 = vld [vmem:[#allocation4 + $0x168] sm:$0xff] }
 0x35b   :  { %926 = vmatpush1.msra.mxu0 %v775_v59  ;;  %997 = vmatpush1.msra.mxu1 %v839_v60  ;;  %v874_v58 = vld [vmem:[#allocation4 + $0x368] sm:$0xff]  ;;  %v809_v59 = vld [vmem:[#allocation4 + $0x160] sm:$0xff] }
 0x35c   :  { %927 = vmatprep.subr.mxu0 %v774_v61  ;;  %998 = vmatprep.subr.mxu1 %v838_v62  ;;  %v873_v60 = vld [vmem:[#allocation4 + $0x360] sm:$0xff]  ;;  %v808_v61 = vld [vmem:[#allocation4 + $0x158] sm:$0xff] }
 0x35d   :  { %928 = vmatpush1.msra.mxu0 %v773_v63  ;;  %999 = vmatpush1.msra.mxu1 %v837_v1  ;;  %v872_v62 = vld [vmem:[#allocation4 + $0x358] sm:$0xff]  ;;  %v807_v63 = vld [vmem:[#allocation4 + $0x150] sm:$0xff] }
 0x35e   :  { %929 = vmatprep.subr.mxu0 %v772_v2  ;;  %1000 = vmatprep.subr.mxu1 %v836_v3  ;;  %v871_v1 = vld [vmem:[#allocation4 + $0x350] sm:$0xff]  ;;  %v806_v2 = vld [vmem:[#allocation4 + $0x148] sm:$0xff] }
 0x35f   :  { %930 = vmatpush1.msra.mxu0 %v771_v4  ;;  %1001 = vmatpush1.msra.mxu1 %v835_v5  ;;  %v870_v3 = vld [vmem:[#allocation4 + $0x348] sm:$0xff]  ;;  %v805_v4 = vld [vmem:[#allocation4 + $0x140] sm:$0xff] }
 0x360   :  { %931 = vmatprep.subr.mxu0 %v770_v6  ;;  %1002 = vmatprep.subr.mxu1 %v834_v9  ;;  %v869_v5 = vld [vmem:[#allocation4 + $0x340] sm:$0xff]  ;;  %v804_v6 = vld [vmem:[#allocation4 + $0x138] sm:$0xff] }
 0x361   :  { %932 = vmatpush1.msra.mxu0 %v769_v11  ;;  %1003 = vmatpush1.msra.mxu1 %v833_v12  ;;  %v868_v9 = vld [vmem:[#allocation4 + $0x338] sm:$0xff]  ;;  %v803_v11 = vld [vmem:[#allocation4 + $0x130] sm:$0xff] }
 0x362   :  { %933 = vmatprep.subr.mxu0 %v768_v13  ;;  %1004 = vmatprep.subr.mxu1 %v832_v14  ;;  %v867_v12 = vld [vmem:[#allocation4 + $0x330] sm:$0xff]  ;;  %v802_v13 = vld [vmem:[#allocation4 + $0x128] sm:$0xff] }
 0x363   :  { %934 = vmatpush1.msra.mxu0 %v767_v15  ;;  %1005 = vmatpush1.msra.mxu1 %v831_v16  ;;  %v866_v14 = vld [vmem:[#allocation4 + $0x328] sm:$0xff]  ;;  %v801_v15 = vld [vmem:[#allocation4 + $0x120] sm:$0xff] }
 0x364   :  { %935 = vmatprep.subr.mxu0 %v766_v17  ;;  %1006 = vmatprep.subr.mxu1 %v830_v18  ;;  %v865_v16 = vld [vmem:[#allocation4 + $0x320] sm:$0xff]  ;;  %v800_v17 = vld [vmem:[#allocation4 + $0x118] sm:$0xff] }
 0x365   :  { %936 = vmatpush1.msra.mxu0 %v765_v19  ;;  %1007 = vmatpush1.msra.mxu1 %v829_v20  ;;  %v864_v18 = vld [vmem:[#allocation4 + $0x318] sm:$0xff]  ;;  %v799_v19 = vld [vmem:[#allocation4 + $0x110] sm:$0xff] }
 0x366   :  { %937 = vmatprep.subr.mxu0 %v828_v21  ;;  %1008 = vmatprep.subr.mxu1 %v892_v22  ;;  %v863_v20 = vld [vmem:[#allocation4 + $0x310] sm:$0xff]  ;;  %v798_v21 = vld [vmem:[#allocation4 + $0x108] sm:$0xff] }
 0x367   :  { %938 = vmatpush2.msra.mxu0 %v827_v23  ;;  %1009 = vmatpush2.msra.mxu1 %v891_v24  ;;  %v862_v22 = vld [vmem:[#allocation4 + $0x308] sm:$0xff]  ;;  %v797_v23 = vld [vmem:[#allocation4 + $0x100] sm:$0xff] }
 0x368   :  { %939 = vmatprep.subr.mxu0 %v826_v25  ;;  %1010 = vmatprep.subr.mxu1 %v890_v26  ;;  %v861_v24 = vld [vmem:[#allocation4 + $0x300] sm:$0xff]  ;;  %v1080_v25 = vld [vmem:[%s2031_s7 + $0xf8] sm:$0xff]  ;;  %v609_v26 = vsub.s32 2, %v1837_v7 }
 0x369   :  { %940 = vmatpush2.msra.mxu0 %v825_v27  ;;  %1011 = vmatpush2.msra.mxu1 %v889_v28  ;;  %v597_v27 = vld [vmem:[%s2038_s14] sm:$0xf]  ;;  %v613_v28 = vsub.s32 3, %v1837_v7  ;;  %v1064_v7 = vld [vmem:[%s2031_s7 + $0x78] sm:$0xff] }
 0x36a   :  { %941 = vmatprep.subr.mxu0 %v824_v29  ;;  %1012 = vmatprep.subr.mxu1 %v888_v30  ;;  %v602_v29 = vrot.slane %v597_v27, %v1840_v8  ;;  %v610_v30 = vrot.slane %v597_v27, %v609_v26 }
 0x36b   :  { %942 = vmatpush2.msra.mxu0 %v823_v31  ;;  %1013 = vmatpush2.msra.mxu1 %v887_v32  ;;  %v606_v31 = vrot.slane %v597_v27, %v1846_v10  ;;  %v614_v32 = vrot.slane %v597_v27, %v613_v28 }
 0x36c   :  { %943 = vmatprep.subr.mxu0 %v822_v33  ;;  %1014 = vmatprep.subr.mxu1 %v886_v34 }
 0x36d   :  { %944 = vmatpush2.msra.mxu0 %v821_v35  ;;  %1015 = vmatpush2.msra.mxu1 %v885_v36 }
 0x36e   :  { %945 = vmatprep.subr.mxu0 %v820_v37  ;;  %1016 = vmatprep.subr.mxu1 %v884_v38 }
 0x36f   :  { %946 = vmatpush2.msra.mxu0 %v819_v39  ;;  %1017 = vmatpush2.msra.mxu1 %v883_v40 }
 0x370   :  { %947 = vmatprep.subr.mxu0 %v818_v41  ;;  %1018 = vmatprep.subr.mxu1 %v882_v42 }
 0x371   :  { %948 = vmatpush2.msra.mxu0 %v817_v43  ;;  %1019 = vmatpush2.msra.mxu1 %v881_v44 }
 0x372   :  { %949 = vmatprep.subr.mxu0 %v816_v45  ;;  %1020 = vmatprep.subr.mxu1 %v880_v46  ;;  %v1079_v45 = vld [vmem:[%s2031_s7 + $0xf0] sm:$0xff] }
 0x373   :  { %950 = vmatpush2.msra.mxu0 %v815_v47  ;;  %1021 = vmatpush2.msra.mxu1 %v879_v48  ;;  %v1063_v46 = vld [vmem:[%s2031_s7 + $0x70] sm:$0xff]  ;;  %v1078_v47 = vld [vmem:[%s2031_s7 + $0xe8] sm:$0xff] }
 0x374   :  { %951 = vmatprep.subr.mxu0 %v814_v49  ;;  %1022 = vmatprep.subr.mxu1 %v878_v50  ;;  %v1062_v48 = vld [vmem:[%s2031_s7 + $0x68] sm:$0xff]  ;;  %v1077_v49 = vld [vmem:[%s2031_s7 + $0xe0] sm:$0xff] }
 0x375   :  { %952 = vmatpush2.msra.mxu0 %v813_v51  ;;  %1023 = vmatpush2.msra.mxu1 %v877_v52  ;;  %v1061_v50 = vld [vmem:[%s2031_s7 + $0x60] sm:$0xff]  ;;  %v1076_v51 = vld [vmem:[%s2031_s7 + $0xd8] sm:$0xff] }
 0x376   :  { %953 = vmatprep.subr.mxu0 %v812_v53  ;;  %1024 = vmatprep.subr.mxu1 %v876_v54  ;;  %v1060_v52 = vld [vmem:[%s2031_s7 + $0x58] sm:$0xff]  ;;  %v1075_v53 = vld [vmem:[%s2031_s7 + $0xd0] sm:$0xff] }
 0x377   :  { %954 = vmatpush2.msra.mxu0 %v811_v55  ;;  %1025 = vmatpush2.msra.mxu1 %v875_v56  ;;  %v1059_v54 = vld [vmem:[%s2031_s7 + $0x50] sm:$0xff]  ;;  %v1074_v55 = vld [vmem:[%s2031_s7 + $0xc8] sm:$0xff] }
 0x378   :  { %955 = vmatprep.subr.mxu0 %v810_v57  ;;  %1026 = vmatprep.subr.mxu1 %v874_v58  ;;  %v1058_v56 = vld [vmem:[%s2031_s7 + $0x48] sm:$0xff]  ;;  %v1073_v57 = vld [vmem:[%s2031_s7 + $0xc0] sm:$0xff] }
 0x379   :  { %956 = vmatpush2.msra.mxu0 %v809_v59  ;;  %1027 = vmatpush2.msra.mxu1 %v873_v60  ;;  %v1057_v58 = vld [vmem:[%s2031_s7 + $0x40] sm:$0xff]  ;;  %v1072_v59 = vld [vmem:[%s2031_s7 + $0xb8] sm:$0xff] }
 0x37a   :  { %957 = vmatprep.subr.mxu0 %v808_v61  ;;  %1028 = vmatprep.subr.mxu1 %v872_v62  ;;  %v1056_v60 = vld [vmem:[%s2031_s7 + $0x38] sm:$0xff]  ;;  %v1071_v61 = vld [vmem:[%s2031_s7 + $0xb0] sm:$0xff] }
 0x37b   :  { %958 = vmatpush2.msra.mxu0 %v807_v63  ;;  %1029 = vmatpush2.msra.mxu1 %v871_v1  ;;  %v1055_v62 = vld [vmem:[%s2031_s7 + $0x30] sm:$0xff]  ;;  %v1070_v63 = vld [vmem:[%s2031_s7 + $0xa8] sm:$0xff] }
 0x37c   :  { %959 = vmatprep.subr.mxu0 %v806_v2  ;;  %1030 = vmatprep.subr.mxu1 %v870_v3  ;;  %v1054_v1 = vld [vmem:[%s2031_s7 + $0x28] sm:$0xff]  ;;  %v1069_v2 = vld [vmem:[%s2031_s7 + $0xa0] sm:$0xff] }
 0x37d   :  { %960 = vmatpush2.msra.mxu0 %v805_v4  ;;  %1031 = vmatpush2.msra.mxu1 %v869_v5  ;;  %v1053_v3 = vld [vmem:[%s2031_s7 + $0x20] sm:$0xff]  ;;  %v1068_v4 = vld [vmem:[%s2031_s7 + $0x98] sm:$0xff] }
 0x37e   :  { %961 = vmatprep.subr.mxu0 %v804_v6  ;;  %1032 = vmatprep.subr.mxu1 %v868_v9  ;;  %v1052_v5 = vld [vmem:[%s2031_s7 + $0x18] sm:$0xff]  ;;  %v1067_v6 = vld [vmem:[%s2031_s7 + $0x90] sm:$0xff] }
 0x37f   :  { %962 = vmatpush2.msra.mxu0 %v803_v11  ;;  %1033 = vmatpush2.msra.mxu1 %v867_v12  ;;  %v1051_v9 = vld [vmem:[%s2031_s7 + $0x10] sm:$0xff]  ;;  %v1066_v11 = vld [vmem:[%s2031_s7 + $0x88] sm:$0xff] }
 0x380   :  { %963 = vmatprep.subr.mxu0 %v802_v13  ;;  %1034 = vmatprep.subr.mxu1 %v866_v14  ;;  %v1050_v12 = vld [vmem:[%s2031_s7 + $0x8] sm:$0xff]  ;;  %v1065_v13 = vld [vmem:[%s2031_s7 + $0x80] sm:$0xff] }
 0x381   :  { %964 = vmatpush2.msra.mxu0 %v801_v15  ;;  %1035 = vmatpush2.msra.mxu1 %v865_v16  ;;  %v1049_v14 = vld [vmem:[%s2031_s7] sm:$0xff]  ;;  %v1166_v15 = vld [vmem:[%s2032_s8 + $0x38] sm:$0xff]  ;;  %v1165_v16 = vld [vmem:[%s2032_s8 + $0x30] sm:$0xff] }
 0x382   :  { %965 = vmatprep.subr.mxu0 %v800_v17  ;;  %1036 = vmatprep.subr.mxu1 %v864_v18  ;;  %v1164_v17 = vld [vmem:[%s2032_s8 + $0x28] sm:$0xff]  ;;  %v893_v18 = vld [vmem:[%s2039_s15] sm:$0x3] }
 0x383   :  { %966 = vmatpush2.msra.mxu0 %v799_v19  ;;  %1037 = vmatpush2.msra.mxu1 %v863_v20  ;;  %v898_v19 = vrot.slane %v893_v18, %v1840_v8  ;;  %v902_v20 = vrot.slane %v893_v18, %v1846_v10  ;;  %v1163_v8 = vld [vmem:[%s2032_s8 + $0x20] sm:$0xff]  ;;  %v1162_v10 = vld [vmem:[%s2032_s8 + $0x18] sm:$0xff] }
 0x384   :  { %967 = vmatprep.subr.mxu0 %v798_v21  ;;  %1038 = vmatprep.subr.mxu1 %v862_v22 }
 0x385   :  { %968 = vmatpush2.msra.mxu0 %v797_v23  ;;  %1039 = vmatpush2.msra.mxu1 %v861_v24 }
 0x386   :  { %1459 = vmatprep.subr.mxu1 %v1547_v0  ;;  %1369 = vmatprep.subr.mxu0 %v1080_v25 }
 0x406   :  { %v685_v33 = vpop.f32.mrf.mxu0  ;;  %v756_v34 = vpop.f32.mrf.mxu1 }
 0x407   :  { %v686_v35 = vadd.f32 %v685_v33, %v602_v29  ;;  %v757_v36 = vadd.f32 %v756_v34, %v610_v30  ;;  %v1159_v33 = vld [vmem:[%s2032_s8] sm:$0xff]  ;;  %v1251_v34 = vld [vmem:[%s2033_s9 + $0x18] sm:$0xff] }
 0x408   :  { %v687_v37 = vpop.f32.mrf.mxu0  ;;  %v758_v38 = vpop.f32.mrf.mxu1 }
 0x409   :  { %v688_v39 = vadd.f32 %v687_v37, %v606_v31  ;;  %v759_v40 = vadd.f32 %v758_v38, %v614_v32  ;;  %v761_v43 = vmax.f32 %v686_v35, 0.0  ;;  %v763_v44 = vmax.f32 %v757_v36, 0.0  ;;  %v1161_v31 = vld [vmem:[%s2032_s8 + $0x10] sm:$0xff]  ;;  %v1160_v32 = vld [vmem:[%s2032_s8 + $0x8] sm:$0xff]  ;;  %v1345_v36 = vld [vmem:[%s2040_s16] ss:$0 sm:$0xff] }
 0x40b   :  { %v762_v41 = vmax.f32 %v688_v39, 0.0  ;;  %v764_v42 = vmax.f32 %v759_v40, 0.0 }
 0x40d   :  { %969 = vmatprep.mubr.f32.mxu0 %v762_v41  ;;  %1040 = vmatprep.mubr.f32.mxu1 %v764_v42  ;;  %v1250_v41 = vld [vmem:[%s2033_s9 + $0x10] sm:$0xff]  ;;  %v1249_v42 = vld [vmem:[%s2033_s9 + $0x8] sm:$0xff] }
 0x40e   :  { %970 = vmatmul.mubr.f32.vlgmr.msra.gmra.mxu0 %v761_v43  ;;  %1041 = vmatmul.mubr.f32.vlgmr.msra.gmra.mxu1 %v763_v44  ;;  %v1248_v43 = vld [vmem:[%s2033_s9] sm:$0xff] }
 0x40f   :  { %1370 = vmatpush3.msra.mxu0 %v1064_v7  ;;  %1475 = vmatprep.mubr.msk.f32.mxu1 %vm1548_vm0, %v1547_v0  ;;  %v1346_v44 = vld [vmem:[%s2041_s17] ss:$0 sm:$0xff] }
 0x410   :  { %1371 = vmatprep.subr.mxu0 %v1079_v45  ;;  %1460 = vmatpush3.msra.mxu1 %v1166_v15 }
 0x411   :  { %1372 = vmatpush3.msra.mxu0 %v1063_v46  ;;  %1461 = vmatprep.subr.mxu1 %v1547_v0 }
 0x412   :  { %1373 = vmatprep.subr.mxu0 %v1078_v47  ;;  %1462 = vmatpush3.msra.mxu1 %v1165_v16 }
 0x413   :  { %1374 = vmatpush3.msra.mxu0 %v1062_v48  ;;  %1463 = vmatprep.subr.mxu1 %v1547_v0  ;;  %v1348_v48 = vld [vmem:[%s2042_s18] ss:$0 sm:$0xff] }
 0x414   :  { %1375 = vmatprep.subr.mxu0 %v1077_v49  ;;  %1464 = vmatpush3.msra.mxu1 %v1164_v17 }
 0x415   :  { %1376 = vmatpush3.msra.mxu0 %v1061_v50  ;;  %1465 = vmatprep.subr.mxu1 %v1547_v0 }
 0x416   :  { %1377 = vmatprep.subr.mxu0 %v1076_v51  ;;  %1466 = vmatpush3.msra.mxu1 %v1163_v8 }
 0x417   :  { %1378 = vmatpush3.msra.mxu0 %v1060_v52  ;;  %1467 = vmatprep.subr.mxu1 %v1547_v0 }
 0x418   :  { %1379 = vmatprep.subr.mxu0 %v1075_v53  ;;  %1468 = vmatpush3.msra.mxu1 %v1162_v10 }
 0x419   :  { %1380 = vmatpush3.msra.mxu0 %v1059_v54  ;;  %1469 = vmatprep.subr.mxu1 %v1547_v0 }
 0x41a   :  { %1381 = vmatprep.subr.mxu0 %v1074_v55  ;;  %1470 = vmatpush3.msra.mxu1 %v1161_v31 }
 0x41b   :  { %1382 = vmatpush3.msra.mxu0 %v1058_v56  ;;  %1471 = vmatprep.subr.mxu1 %v1547_v0 }
 0x41c   :  { %1383 = vmatprep.subr.mxu0 %v1073_v57  ;;  %1472 = vmatpush3.msra.mxu1 %v1160_v32 }
 0x41d   :  { %1384 = vmatpush3.msra.mxu0 %v1057_v58  ;;  %1473 = vmatprep.subr.mxu1 %v1547_v0 }
 0x41e   :  { %1385 = vmatprep.subr.mxu0 %v1072_v59  ;;  %1474 = vmatpush3.msra.mxu1 %v1159_v33 }
 0x41f   :  { %1386 = vmatpush3.msra.mxu0 %v1056_v60 }
 0x420   :  { %1387 = vmatprep.subr.mxu0 %v1071_v61 }
 0x421   :  { %1388 = vmatpush3.msra.mxu0 %v1055_v62 }
 0x422   :  { %1389 = vmatprep.subr.mxu0 %v1070_v63 }
 0x423   :  { %1390 = vmatpush3.msra.mxu0 %v1054_v1 }
 0x424   :  { %1391 = vmatprep.subr.mxu0 %v1069_v2 }
 0x425   :  { %1392 = vmatpush3.msra.mxu0 %v1053_v3 }
 0x426   :  { %1393 = vmatprep.subr.mxu0 %v1068_v4 }
 0x427   :  { %1394 = vmatpush3.msra.mxu0 %v1052_v5 }
 0x428   :  { %1395 = vmatprep.subr.mxu0 %v1067_v6 }
 0x429   :  { %1396 = vmatpush3.msra.mxu0 %v1051_v9 }
 0x42a   :  { %1397 = vmatprep.subr.mxu0 %v1066_v11 }
 0x42b   :  { %1398 = vmatpush3.msra.mxu0 %v1050_v12 }
 0x42c   :  { %1399 = vmatprep.subr.mxu0 %v1065_v13 }
 0x42d   :  { %1400 = vmatpush3.msra.mxu0 %v1049_v14 }
 0x42e   :  { %1478 = vmatprep.subr.mxu0 %v1547_v0 }
 0x4ce   :  { %v971_v21 = vpop.f32.mrf.mxu0  ;;  %v1042_v22 = vpop.f32.mrf.mxu1 }
 0x4cf   :  { %v972_v23 = vadd.f32 %v971_v21, %v898_v19 }
 0x4d0   :  { %v973_v24 = vpop.f32.mrf.mxu0  ;;  %v1044_v27 = vpop.f32.mrf.mxu1 }
 0x4d1   :  { %v974_v25 = vadd.f32 %v973_v24, %v902_v20  ;;  %v1043_v26 = vadd.f32 %v1042_v22, %v972_v23 }
 0x4d3   :  { %v1045_v28 = vadd.f32 %v1044_v27, %v974_v25  ;;  %v1047_v30 = vmax.f32 %v1043_v26, 0.0 }
 0x4d5   :  { %v1048_v29 = vmax.f32 %v1045_v28, 0.0 }
 0x4d7   :  { %1152 = vmatprep.mubr.f32.mxu0 %v1048_v29 }
 0x4d8   :  { %1153 = vmatmul.mubr.f32.vlgmr.msra.gmra.mxu0 %v1047_v30 }
 0x4d9   :  { %1486 = vmatprep.mubr.msk.f32.mxu0 %vm1548_vm0, %v1547_v0  ;;  %1479 = vmatpush3.msra.mxu0 %v1251_v34 }
 0x4da   :  { %1480 = vmatprep.subr.mxu0 %v1547_v0 }
 0x4db   :  { %1481 = vmatpush3.msra.mxu0 %v1250_v41 }
 0x4dc   :  { %1482 = vmatprep.subr.mxu0 %v1547_v0 }
 0x4dd   :  { %1483 = vmatpush3.msra.mxu0 %v1249_v42 }
 0x4de   :  { %1484 = vmatprep.subr.mxu0 %v1547_v0 }
 0x4df   :  { %1485 = vmatpush3.msra.mxu0 %v1248_v43 }
 0x598   :  { %v1401_v35 = vpop.f32.mrf.mxu0 }
 0x59a   :  { %v1402_v37 = vpop.f32.mrf.mxu0 }
 0x59b   :  { %v1403_v38 = vadd.f32 %v1402_v37, %v1401_v35 }
 0x59d   :  { %v1155_v39 = vadd.f32 %v1403_v38, %v1345_v36 }
 0x59f   :  { %v1158_v40 = vmax.f32 %v1155_v39, 0.0 }
 0x5a1   :  { %1476 = vmatmul.mubr.msk.f32.vlgmr.msra.gmra.mxu1 %vm277_vm2, %v1158_v40 }
 0x661   :  { %v1243_v7 = vpop.f32.mrf.mxu1 }
 0x662   :  { %v1244_v45 = vadd.f32 %v1346_v44, %v1243_v7 }
 0x663   :  { %v1477_v46 = vpop.f32.mrf.mxu1 }
 0x664   :  { %v1247_v47 = vmax.f32 %v1244_v45, 0.0 }
 0x666   :  { %1487 = vmatmul.mubr.msk.f32.vlgmr.msra.gmra.mxu0 %vm102_vm1, %v1247_v47 }
 0x726   :  { %v1328_v0 = vpop.f32.mrf.mxu0 }
 0x727   :  { %v1329_v49 = vadd.f32 %v1348_v48, %v1328_v0 }
 0x728   :  { %v1488_v50 = vpop.f32.mrf.mxu0 }
 0x729   :  { %1332 = vst [vmem:[%s2043_s19] sm:$0xff] %v1329_v49 }
 0x72a   :  { %1337 = vsyncpa [#allocation3], 1 }
 0x72b   :  { %1338 = vsyncpa [#allocation5], 1 }

</bundles_post_ra>
